<compile_context>
chip_gen: v6e
topology: v6e:2x2x1
jax: 0.10.0
libtpu: 0.0.40
codegen_flags: <defaults>
</compile_context>

<pallas_src>
import functools

import jax
import jax.numpy as jnp
from jax.experimental import pallas as pl
from jax.experimental.pallas import tpu as pltpu


def _gelu_tanh(x):
    # tanh-approximate GELU; tanh lowers to the EUP (separate slot next to MXU/VPU work).
    c = jnp.float32(0.7978845608028654)  # sqrt(2/pi)
    return 0.5 * x * (1.0 + jnp.tanh(c * (x + 0.044715 * x * x * x)))


def _cdiv(a, b):
    return (a + b - 1) // b


def _round_up(a, b):
    return _cdiv(a, b) * b


def _ffn_kernel(x_ref, g_ref, b_ref, w1_ref, b1_ref, w2_ref, b2_ref, o_ref,
                xn_ref, acc_ref, *, eps):
    """Fused LN -> Linear1 -> GELU -> Linear2 for one (tm, dim) x (dim, th) tile pair.

    Grid = (row tiles, hidden tiles).  The hidden axis is a reduction for the
    second matmul: acc_ref accumulates f32 partial sums; the output is stored on
    the last hidden step.
    """
    h_idx = pl.program_id(1)
    n_h = pl.num_programs(1)

    @pl.when(h_idx == 0)
    def _():
        # LayerNorm statistics in f32 regardless of input dtype.
        x = x_ref[...].astype(jnp.float32)                       # (tm, dim)
        mean = jnp.mean(x, axis=-1, keepdims=True)
        xc = x - mean
        var = jnp.mean(xc * xc, axis=-1, keepdims=True)
        xn = xc * jax.lax.rsqrt(var + eps)
        xn = xn * g_ref[...].astype(jnp.float32) + b_ref[...].astype(jnp.float32)
        # Downcast once to the weight dtype so the MXU sees its native format.
        xn_ref[...] = xn.astype(xn_ref.dtype)
        acc_ref[...] = jnp.zeros_like(acc_ref)

    # Linear1 tile (MXU, native weight dtype) + bias + GELU (f32 VPU/EUP).
    hpre = jnp.dot(xn_ref[...], w1_ref[...],
                   preferred_element_type=jnp.float32)            # (tm, th) f32
    hact = _gelu_tanh(hpre + b1_ref[...].astype(jnp.float32))

    # Linear2 partial contraction over this hidden tile (MXU), f32 accumulate.
    acc_ref[...] += jnp.dot(hact.astype(w2_ref.dtype), w2_ref[...],
                            preferred_element_type=jnp.float32)   # (tm, dim)

    @pl.when(h_idx == n_h - 1)
    def _():
        y = acc_ref[...] + b2_ref[...].astype(jnp.float32)
        # Single cast at the final, lane-dense store.
        o_ref[...] = y.astype(o_ref.dtype)


def _pick_block_hidden(dim, hidden, w_itemsize, budget_bytes):
    """Largest multiple-of-128 divisor of `hidden` whose double-buffered W1/W2
    tiles fit `budget_bytes`; falls back to the full hidden dim."""
    if hidden % 128 != 0:
        return hidden  # cannot tile lane-dense; keep weights fully resident
    per_col_bytes = 2 * (2 * dim) * w_itemsize   # one W1 column + one W2 row, 2 buffers
    max_th = max(128, budget_bytes // per_col_bytes)
    best = 128
    th = 128
    while th <= hidden:
        if hidden % th == 0 and th <= max_th:
            best = th
        th += 128
    return best


def _vmem_limit_bytes(tm, dim, th, x_item, w_item, o_item):
    est = 0
    est += 2 * tm * dim * x_item                 # x tiles (double-buffered)
    est += 2 * tm * dim * o_item                 # out tiles
    est += 2 * (dim * th + th * dim) * w_item    # W1/W2 tiles (double-buffered)
    est += 4 * (th + 3 * dim) * 4                # biases + gamma/beta (generous)
    est += tm * dim * w_item                     # xn scratch
    est += tm * dim * 4                          # f32 accumulator scratch
    est += 2 * tm * th * 4                       # in-flight (tm, th) f32 temporaries
    limit = int(est * 1.25) + (8 << 20)
    # >= scoped defaults on v5e/v6e, <= safe cap for v7x's 64 MiB physical VMEM.
    return max(32 << 20, min(limit, 48 << 20))


def feed_forward(x, gamma, beta, w1, b1, w2, b2, *, eps=1e-5,
                 block_rows=256, block_hidden=None):
    """Pallas equivalent of FeedForward.forward: LN -> Linear -> GELU -> Linear."""
    dim = x.shape[-1]
    hidden = w1.shape[1]
    assert w1.shape == (dim, hidden), w1.shape
    assert w2.shape == (hidden, dim), w2.shape

    lead = x.shape[:-1]
    x2 = x.reshape(-1, dim)
    n = x2.shape[0]

    # --- row tile: keep M >= 128 for the MXU; no wrapper-side padding (ragged
    # last tile is masked by Pallas). Split into >= 2 steps when possible so the
    # "parallel" axis can shard across v7x's two TensorCores.
    tm = min(block_rows, _round_up(max(n, 1), 128))
    if _cdiv(n, tm) == 1 and n >= 256:
        tm = _round_up(_cdiv(n, 2), 8)
    grid_m = _cdiv(n, tm)

    # --- hidden tile: bound resident weight footprint (fits v7x VMEM at real ViT sizes).
    w_item = jnp.dtype(w1.dtype).itemsize
    if block_hidden is None:
        th = _pick_block_hidden(dim, hidden, w_item, budget_bytes=16 << 20)
    else:
        th = block_hidden
        assert hidden % th == 0, (hidden, th)
        assert th == hidden or th % 128 == 0, th
    grid_h = hidden // th

    g2 = gamma.reshape(1, dim)
    be2 = beta.reshape(1, dim)
    b1r = b1.reshape(1, hidden)
    b2r = b2.reshape(1, dim)

    vmem_limit = _vmem_limit_bytes(
        tm, dim, th,
        jnp.dtype(x.dtype).itemsize, w_item, jnp.dtype(x.dtype).itemsize)

    kernel = functools.partial(_ffn_kernel, eps=eps)

    out = pl.pallas_call(
        kernel,
        out_shape=jax.ShapeDtypeStruct((n, dim), x.dtype),
        grid_spec=pltpu.PrefetchScalarGridSpec(
            num_scalar_prefetch=0,
            grid=(grid_m, grid_h),
            in_specs=[
                pl.BlockSpec((tm, dim), lambda i, h: (i, 0)),     # x row tile
                pl.BlockSpec((1, dim), lambda i, h: (0, 0)),      # LN gamma
                pl.BlockSpec((1, dim), lambda i, h: (0, 0)),      # LN beta
                pl.BlockSpec((dim, th), lambda i, h: (0, h)),     # W1 hidden tile
                pl.BlockSpec((1, th), lambda i, h: (0, h)),       # b1 hidden tile
                pl.BlockSpec((th, dim), lambda i, h: (h, 0)),     # W2 hidden tile
                pl.BlockSpec((1, dim), lambda i, h: (0, 0)),      # b2
            ],
            out_specs=pl.BlockSpec((tm, dim), lambda i, h: (i, 0)),
            scratch_shapes=[
                pltpu.VMEM((tm, dim), w1.dtype),     # cached LN output (MXU-ready dtype)
                pltpu.VMEM((tm, dim), jnp.float32),  # f32 accumulator for linear2
            ],
        ),
        compiler_params=pltpu.CompilerParams(
            dimension_semantics=("parallel", "arbitrary"),
            vmem_limit_bytes=vmem_limit,
        ),
    )(x2, g2, be2, w1, b1r, w2, b2r)

    return out.reshape(*lead, dim)


def _reference_feed_forward(x, gamma, beta, w1, b1, w2, b2, eps=1e-5):
    """Pure-JAX port of the PyTorch forward, for verification."""
    xf = x.astype(jnp.float32)
    mean = xf.mean(-1, keepdims=True)
    var = ((xf - mean) ** 2).mean(-1, keepdims=True)
    xn = (xf - mean) * jax.lax.rsqrt(var + eps)
    xn = xn * gamma.astype(jnp.float32) + beta.astype(jnp.float32)
    h = jnp.dot(xn, w1.astype(jnp.float32),
                precision=jax.lax.Precision.HIGHEST) + b1.astype(jnp.float32)
    h = _gelu_tanh(h)
    y = jnp.dot(h, w2.astype(jnp.float32),
                precision=jax.lax.Precision.HIGHEST) + b2.astype(jnp.float32)
    return y.astype(x.dtype)


if __name__ == "__main__":
    key = jax.random.PRNGKey(0)
    k_x, k_g, k_b, k_w1, k_b1, k_w2, k_b2 = jax.random.split(key, 7)

    batch, seq, dim, hidden = 2, 8, 128, 256  # small, lane-dense demo shapes

    x = jax.random.normal(k_x, (batch, seq, dim), dtype=jnp.float32)
    gamma = 1.0 + 0.1 * jax.random.normal(k_g, (dim,), dtype=jnp.float32)
    beta = 0.05 * jax.random.normal(k_b, (dim,), dtype=jnp.float32)
    w1 = jax.random.normal(k_w1, (dim, hidden), dtype=jnp.float32) / jnp.sqrt(dim)
    b1 = 0.02 * jax.random.normal(k_b1, (hidden,), dtype=jnp.float32)
    w2 = jax.random.normal(k_w2, (hidden, dim), dtype=jnp.float32) / jnp.sqrt(hidden)
    b2 = 0.02 * jax.random.normal(k_b2, (dim,), dtype=jnp.float32)

    ref = _reference_feed_forward(x, gamma, beta, w1, b1, w2, b2)

    # (a) hidden tiled over 2 reduction steps (exercises the accumulator path),
    # (b) auto block sizes (hidden fully resident at these small shapes).
    y_tiled = feed_forward(x, gamma, beta, w1, b1, w2, b2,
                           block_rows=128, block_hidden=128)
    y_auto = feed_forward(x, gamma, beta, w1, b1, w2, b2)
    y_tiled, y_auto = jax.block_until_ready((y_tiled, y_auto))

    for y in (y_tiled, y_auto):
        assert y.shape == x.shape, y.shape
        assert y.dtype == x.dtype, y.dtype
        max_err = float(jnp.max(jnp.abs(y - ref)))
        assert jnp.allclose(y, ref, atol=2e-3, rtol=2e-3), max_err

    print("KERNEL_OK")
</pallas_src>

<mosaic_0001>
module attributes {stable_mosaic.version = 11 : i64} {
  func.func @_ffn_kernel(%arg0: i32, %arg1: i32, %arg2: memref<128x128xf32, #tpu.memory_space<vmem>>, %arg3: memref<1x128xf32, #tpu.memory_space<vmem>>, %arg4: memref<1x128xf32, #tpu.memory_space<vmem>>, %arg5: memref<128x128xf32, #tpu.memory_space<vmem>>, %arg6: memref<1x128xf32, #tpu.memory_space<vmem>>, %arg7: memref<128x128xf32, #tpu.memory_space<vmem>>, %arg8: memref<1x128xf32, #tpu.memory_space<vmem>>, %arg9: memref<128x128xf32, #tpu.memory_space<vmem>>, %arg10: memref<128x128xf32, #tpu.memory_space<vmem>>, %arg11: memref<128x128xf32, #tpu.memory_space<vmem>>) attributes {dimension_semantics = [#tpu.dimension_semantics<parallel>, #tpu.dimension_semantics<arbitrary>], iteration_bounds = array<i64: 1, 2>, scalar_prefetch = 0 : i64, scratch_operands = 2 : i64, tpu.core_type = #tpu.core_type<tc>, window_params = [{transform_indices = @transform_0, window_bounds = array<i64: 128, 128>}, {pipeline_mode = #tpu.pipeline_mode<synchronous>, transform_indices = @transform_1, window_bounds = array<i64: 1, 128>}, {pipeline_mode = #tpu.pipeline_mode<synchronous>, transform_indices = @transform_2, window_bounds = array<i64: 1, 128>}, {transform_indices = @transform_3, window_bounds = array<i64: 128, 128>}, {transform_indices = @transform_4, window_bounds = array<i64: 1, 128>}, {transform_indices = @transform_5, window_bounds = array<i64: 128, 128>}, {pipeline_mode = #tpu.pipeline_mode<synchronous>, transform_indices = @transform_6, window_bounds = array<i64: 1, 128>}, {transform_indices = @transform_7, window_bounds = array<i64: 128, 128>}]} {
    %c0_i32 = arith.constant 0 : i32
    %0 = arith.cmpi eq, %arg1, %c0_i32 : i32
    %1 = arith.extui %0 : i1 to i32
    %c0_i32_0 = arith.constant 0 : i32
    %2 = arith.cmpi ne, %1, %c0_i32_0 : i32
    scf.if %2 {
      %c0_18 = arith.constant 0 : index
      %c0_19 = arith.constant 0 : index
      %30 = vector.load %arg2[%c0_18, %c0_19] : memref<128x128xf32, #tpu.memory_space<vmem>>, vector<128x128xf32>
      %cst_20 = arith.constant dense<0.000000e+00> : vector<128xf32>
      %31 = vector.multi_reduction <add>, %30, %cst_20 [1] : vector<128x128xf32> to vector<128xf32>
      %32 = vector.shape_cast %31 : vector<128xf32> to vector<128x1xf32>
      %cst_21 = arith.constant 1.280000e+02 : f32
      %33 = vector.broadcast %cst_21 : f32 to vector<128x1xf32>
      %34 = arith.divf %32, %33 : vector<128x1xf32>
      %35 = vector.broadcast %34 : vector<128x1xf32> to vector<128x128xf32>
      %36 = arith.subf %30, %35 : vector<128x128xf32>
      %37 = arith.mulf %36, %36 : vector<128x128xf32>
      %cst_22 = arith.constant dense<0.000000e+00> : vector<128xf32>
      %38 = vector.multi_reduction <add>, %37, %cst_22 [1] : vector<128x128xf32> to vector<128xf32>
      %39 = vector.shape_cast %38 : vector<128xf32> to vector<128x1xf32>
      %cst_23 = arith.constant 1.280000e+02 : f32
      %40 = vector.broadcast %cst_23 : f32 to vector<128x1xf32>
      %41 = arith.divf %39, %40 : vector<128x1xf32>
      %cst_24 = arith.constant 9.99999974E-6 : f32
      %42 = vector.broadcast %cst_24 : f32 to vector<128x1xf32>
      %43 = arith.addf %41, %42 : vector<128x1xf32>
      %44 = math.rsqrt %43 : vector<128x1xf32>
      %45 = vector.broadcast %44 : vector<128x1xf32> to vector<128x128xf32>
      %46 = arith.mulf %36, %45 : vector<128x128xf32>
      %c0_25 = arith.constant 0 : index
      %c0_26 = arith.constant 0 : index
      %47 = vector.load %arg3[%c0_25, %c0_26] : memref<1x128xf32, #tpu.memory_space<vmem>>, vector<1x128xf32>
      %48 = vector.broadcast %47 : vector<1x128xf32> to vector<128x128xf32>
      %49 = arith.mulf %46, %48 : vector<128x128xf32>
      %c0_27 = arith.constant 0 : index
      %c0_28 = arith.constant 0 : index
      %50 = vector.load %arg4[%c0_27, %c0_28] : memref<1x128xf32, #tpu.memory_space<vmem>>, vector<1x128xf32>
      %51 = vector.broadcast %50 : vector<1x128xf32> to vector<128x128xf32>
      %52 = arith.addf %49, %51 : vector<128x128xf32>
      %c0_29 = arith.constant 0 : index
      %c0_30 = arith.constant 0 : index
      %53 = vector.load %arg10[%c0_29, %c0_30] : memref<128x128xf32, #tpu.memory_space<vmem>>, vector<128x128xf32>
      tpu.vector_store %arg10[%c0_29, %c0_30], %52 {strides = array<i32>} : memref<128x128xf32, #tpu.memory_space<vmem>>, vector<128x128xf32>,
      %cst_31 = arith.constant 0.000000e+00 : f32
      %54 = vector.broadcast %cst_31 : f32 to vector<128x128xf32>
      %c0_32 = arith.constant 0 : index
      %c0_33 = arith.constant 0 : index
      %55 = vector.load %arg11[%c0_32, %c0_33] : memref<128x128xf32, #tpu.memory_space<vmem>>, vector<128x128xf32>
      tpu.vector_store %arg11[%c0_32, %c0_33], %54 {strides = array<i32>} : memref<128x128xf32, #tpu.memory_space<vmem>>, vector<128x128xf32>,
    } else {
    }
    %c0 = arith.constant 0 : index
    %c0_1 = arith.constant 0 : index
    %3 = vector.load %arg10[%c0, %c0_1] : memref<128x128xf32, #tpu.memory_space<vmem>>, vector<128x128xf32>
    %c0_2 = arith.constant 0 : index
    %c0_3 = arith.constant 0 : index
    %4 = vector.load %arg5[%c0_2, %c0_3] : memref<128x128xf32, #tpu.memory_space<vmem>>, vector<128x128xf32>
    %cst = arith.constant dense<0.000000e+00> : vector<128x128xf32>
    %5 = tpu.matmul %3, %4, %cst {dimension_numbers = #tpu.dot_dimension_numbers<[1], [0], [0], [1], [0, 0, 1, 1], [], []>} : vector<128x128xf32>, vector<128x128xf32>, vector<128x128xf32> -> vector<128x128xf32>
    %c0_4 = arith.constant 0 : index
    %c0_5 = arith.constant 0 : index
    %6 = vector.load %arg6[%c0_4, %c0_5] : memref<1x128xf32, #tpu.memory_space<vmem>>, vector<1x128xf32>
    %7 = vector.broadcast %6 : vector<1x128xf32> to vector<128x128xf32>
    %8 = arith.addf %5, %7 : vector<128x128xf32>
    %cst_6 = arith.constant 5.000000e-01 : f32
    %9 = vector.broadcast %cst_6 : f32 to vector<128x128xf32>
    %10 = arith.mulf %9, %8 : vector<128x128xf32>
    %cst_7 = arith.constant 4.471500e-02 : f32
    %11 = vector.broadcast %cst_7 : f32 to vector<128x128xf32>
    %12 = arith.mulf %11, %8 : vector<128x128xf32>
    %13 = arith.mulf %12, %8 : vector<128x128xf32>
    %14 = arith.mulf %13, %8 : vector<128x128xf32>
    %15 = arith.addf %8, %14 : vector<128x128xf32>
    %cst_8 = arith.constant 0.797884583 : f32
    %16 = vector.broadcast %cst_8 : f32 to vector<128x128xf32>
    %17 = arith.mulf %16, %15 : vector<128x128xf32>
    %18 = math.tanh %17 : vector<128x128xf32>
    %cst_9 = arith.constant 1.000000e+00 : f32
    %19 = vector.broadcast %cst_9 : f32 to vector<128x128xf32>
    %20 = arith.addf %19, %18 : vector<128x128xf32>
    %21 = arith.mulf %10, %20 : vector<128x128xf32>
    %c0_10 = arith.constant 0 : index
    %c0_11 = arith.constant 0 : index
    %22 = vector.load %arg11[%c0_10, %c0_11] : memref<128x128xf32, #tpu.memory_space<vmem>>, vector<128x128xf32>
    %c0_12 = arith.constant 0 : index
    %c0_13 = arith.constant 0 : index
    %23 = vector.load %arg7[%c0_12, %c0_13] : memref<128x128xf32, #tpu.memory_space<vmem>>, vector<128x128xf32>
    %cst_14 = arith.constant dense<0.000000e+00> : vector<128x128xf32>
    %24 = tpu.matmul %21, %23, %cst_14 {dimension_numbers = #tpu.dot_dimension_numbers<[1], [0], [0], [1], [0, 0, 1, 1], [], []>} : vector<128x128xf32>, vector<128x128xf32>, vector<128x128xf32> -> vector<128x128xf32>
    %25 = arith.addf %22, %24 : vector<128x128xf32>
    %c0_15 = arith.constant 0 : index
    %c0_16 = arith.constant 0 : index
    %26 = vector.load %arg11[%c0_15, %c0_16] : memref<128x128xf32, #tpu.memory_space<vmem>>, vector<128x128xf32>
    tpu.vector_store %arg11[%c0_15, %c0_16], %25 {strides = array<i32>} : memref<128x128xf32, #tpu.memory_space<vmem>>, vector<128x128xf32>,
    %c1_i32 = arith.constant 1 : i32
    %27 = arith.cmpi eq, %arg1, %c1_i32 : i32
    %28 = arith.extui %27 : i1 to i32
    %c0_i32_17 = arith.constant 0 : i32
    %29 = arith.cmpi ne, %28, %c0_i32_17 : i32
    scf.if %29 {
      %c0_18 = arith.constant 0 : index
      %c0_19 = arith.constant 0 : index
      %30 = vector.load %arg11[%c0_18, %c0_19] : memref<128x128xf32, #tpu.memory_space<vmem>>, vector<128x128xf32>
      %c0_20 = arith.constant 0 : index
      %c0_21 = arith.constant 0 : index
      %31 = vector.load %arg8[%c0_20, %c0_21] : memref<1x128xf32, #tpu.memory_space<vmem>>, vector<1x128xf32>
      %32 = vector.broadcast %31 : vector<1x128xf32> to vector<128x128xf32>
      %33 = arith.addf %30, %32 : vector<128x128xf32>
      %c0_22 = arith.constant 0 : index
      %c0_23 = arith.constant 0 : index
      %34 = vector.load %arg9[%c0_22, %c0_23] : memref<128x128xf32, #tpu.memory_space<vmem>>, vector<128x128xf32>
      tpu.vector_store %arg9[%c0_22, %c0_23], %33 {strides = array<i32>} : memref<128x128xf32, #tpu.memory_space<vmem>>, vector<128x128xf32>,
    } else {
    }
    return
  }
  func.func @transform_0(%arg0: i32, %arg1: i32) -> (i32, i32) {
    %c0_i32 = arith.constant 0 : i32
    %c0_i32_0 = arith.constant 0 : i32
    return %arg0, %c0_i32 : i32, i32
  }
  func.func @transform_1(%arg0: i32, %arg1: i32) -> (i32, i32) {
    %c0_i32 = arith.constant 0 : i32
    %c0_i32_0 = arith.constant 0 : i32
    %c0_i32_1 = arith.constant 0 : i32
    return %c0_i32, %c0_i32_0 : i32, i32
  }
  func.func @transform_2(%arg0: i32, %arg1: i32) -> (i32, i32) {
    %c0_i32 = arith.constant 0 : i32
    %c0_i32_0 = arith.constant 0 : i32
    %c0_i32_1 = arith.constant 0 : i32
    return %c0_i32, %c0_i32_0 : i32, i32
  }
  func.func @transform_3(%arg0: i32, %arg1: i32) -> (i32, i32) {
    %c0_i32 = arith.constant 0 : i32
    %c0_i32_0 = arith.constant 0 : i32
    return %c0_i32, %arg1 : i32, i32
  }
  func.func @transform_4(%arg0: i32, %arg1: i32) -> (i32, i32) {
    %c0_i32 = arith.constant 0 : i32
    %c0_i32_0 = arith.constant 0 : i32
    return %c0_i32, %arg1 : i32, i32
  }
  func.func @transform_5(%arg0: i32, %arg1: i32) -> (i32, i32) {
    %c0_i32 = arith.constant 0 : i32
    %c0_i32_0 = arith.constant 0 : i32
    return %arg1, %c0_i32 : i32, i32
  }
  func.func @transform_6(%arg0: i32, %arg1: i32) -> (i32, i32) {
    %c0_i32 = arith.constant 0 : i32
    %c0_i32_0 = arith.constant 0 : i32
    %c0_i32_1 = arith.constant 0 : i32
    return %c0_i32, %c0_i32_0 : i32, i32
  }
  func.func @transform_7(%arg0: i32, %arg1: i32) -> (i32, i32) {
    %c0_i32 = arith.constant 0 : i32
    %c0_i32_0 = arith.constant 0 : i32
    return %arg0, %c0_i32 : i32, i32
  }
}

</mosaic_0001>

<bundles_post_ra>
// kernel: tpu_custom_call.1
= control target key start
LH: loop header
LB: loop body
LE: loop exit
PB: predicated region body
PF: predicated region fallthrough
CT: control target
= control target key end

     0   :  { %s2453_s0 = inlined_call_operand.hbm [shape: f32[16,128], index: 0, kind: input, shape index: {}]   ;;  %s2454_s1 = inlined_call_operand.vmem [shape: f32[1,128], index: 1, kind: input, shape index: {}]   ;;  %s2455_s2 = inlined_call_operand.hbm [shape: f32[1,128], index: 2, kind: input, shape index: {}]   ;;  %s2456_s3 = inlined_call_operand.hbm [shape: f32[128,256], index: 3, kind: input, shape index: {}]   ;;  %s2457_s4 = inlined_call_operand.vmem [shape: f32[1,256], index: 4, kind: input, shape index: {}]   ;;  %s2458_s5 = inlined_call_operand.hbm [shape: f32[256,128], index: 5, kind: input, shape index: {}]   ;;  %s2459_s6 = inlined_call_operand.vmem [shape: f32[1,128], index: 6, kind: input, shape index: {}]   ;;  %s2460_s7 = inlined_call_operand.hbm [shape: f32[16,128], index: 7, kind: output, shape index: {}]  }
   0x1   :  { %2462 = sst [smem:[#allocation18_spill]] %s2453_s0 }
   0x2   :  { %2463 = sst [smem:[#allocation19_spill]] %s2455_s2 }
   0x3   :  { %2464 = sst [smem:[#allocation20_spill]] %s2456_s3 }
   0x4   :  { %12 = vsyncpa [#allocation5], 0 }
   0x5   :  { %13 = vsyncpa [#allocation8], 0 }
   0x6   :  { %14 = vsyncpa [#allocation6], 0  ;;  %s1980_s24 = smov 0   ;;  %s1982_s25 = smov 0  }
   0x7   :  { %s1984_s26 = smov 0   ;;  %s1986_s27 = smov 0  }
   0x8   :  { %s1988_s28 = smov 0   ;;  %s1990_s29 = smov 0  }
   0x9 LB: > { %s2009_s30 = sadd.s32 4294967295, %s1925_s29   ;;  %s29_s8 = sadd.s32 1, %s1921_s28  ;;  %s1925_s29 = sphi %s1990_s29, %s20_s29   ;;  %s1921_s28 = sphi %s1988_s28, %s2480_s28   ;;  %s1917_s27 = sphi %s1986_s27, %s2479_s27   ;;  %s1913_s26 = sphi %s1984_s26, %s2478_s26   ;;  %s1909_s25 = sphi %s1982_s25, %s2477_s25   ;;  %s1905_s24 = sphi %s1980_s24, %s2476_s24  }
   0xa   : > { %p30_p0 = scmp.ge.s32.totalorder %s29_s8, 2  ;;  %s107_s9 = sadd.s32 1, %s1913_s26 }
   0xb   : > { %p114_p1 = scmp.ne.s32.totalorder %s1913_s26, %s1909_s25  ;;  %p115_p2 = scmp.eq.s32.totalorder %s1925_s29, 0 }
   0xc   : > { %s2482_s8 = smov (%p30_p0, %s29_s8), 0  ;;  %p120_p4 = scmp.ne.s32.totalorder %s1909_s25, %s1905_s24 }
   0xd   : > { %2465 = sst [smem:[#allocation16_spill]] %s2482_s8  ;;  %p2018_p3 = por %p115_p2, %p114_p1 }
   0xe   : > { %s104_s11 = ssub.s32 %s1921_s28, %s2482_s8  ;;  %p121_p5 = scmp.eq.s32.totalorder %s2009_s30, 0 }
   0xf   : > { %p105_p6 = scmp.eq.s32.totalorder %s104_s11, 0  ;;  %p1395_p7 = scmp.ge.s32.totalorder %s1925_s29, 1 }
  0x10   : > { %p2029_p8 = por %p121_p5, %p120_p4  ;;  %p230_p9 = scmp.lt.s32.totalorder %s1925_s29, 3 }
  0x11   : > { %s2035_s13 = scalar_select %p105_p6, %s1913_s26, %s107_s9  }
  0x12   : > { %p2037_p10 = pnand %p1395_p7, %p230_p9 }
  0x13   : > { %2468 = sst [smem:[#allocation17_spill]] %s2035_s13  ;;  %p1396_p11 = scmp.ne.s32.totalorder (!%p2037_p10), %s2009_s30, 0 }
  0x14   : > { %234 = sbr.rel (%p2037_p10) target bundleno = 68 (0x44), region = 12 }
  0x19   : > { %238 = sbr.rel (%p1396_p11) target bundleno = 49 (0x31), region = 16 }
  0x1e   : > { %244 = vsyncadd [#allocation5], 1792  ;;  %s1927_s15 = smov [#allocation4]  }
  0x1f   : > { %s249_s16 = sshll.u32 %s1927_s15, 4  ;;  %s250_s16 = int_to_ptr.vmem [resolvable:$true] %s249_s16 }
  0x20   : > { %s1751_s17 = scalar_lea.vmem %s250_s16, 256  ;;  %s1755_s18 = scalar_lea.vmem %s250_s16, 2048 }
  0x21   : > { %p1752_p12 = scmp.ne.s32.totalorder %s250_s16, %s1751_s17  ;;  %p1756_p13 = scmp.lt.s32.totalorder %s250_s16, %s250_s16 }
  0x22   : > { %p1757_p0 = scmp.lt.s32.totalorder %s1755_s18, %s1751_s17 }
  0x24   : > { %p1758_p1 = por %p1757_p0, %p1756_p13 }
  0x26   : > { %p1759_p2 = pnand %p1758_p1, %p1752_p12 }
  0x28   : > { %1762 = shalt.err (!%p1759_p2)
}
  0x29   : > { %s1928_s19 = smov 128   ;;  %s1929_s20 = smov 8  }
  0x2a   : > { %s2470_s0 = sld [smem:[#allocation18_spill]] }
  0x30   : > { %255 = dma.hbm_to_vmem [thread:$0]  %s2470_s0, 256, %s250_s16, [#allocation5], %s1928_s19, %s1928_s19, %s1929_s20  }
  0x31 PF: > { %s1930_s23 = smov [#allocation7]  }
  0x32   : > { %s266_s24 = sshll.u32 %s1930_s23, 4  ;;  %s267_s24 = int_to_ptr.vmem [resolvable:$true] %s266_s24 }
  0x33   : > { %s1773_s9 = scalar_lea.vmem %s267_s24, 16  ;;  %s1779_s11 = scalar_lea.vmem %s267_s24, 32 }
  0x34   : > { %p1774_p4 = scmp.ne.s32.totalorder %s267_s24, %s1773_s9  ;;  %p1780_p9 = scmp.lt.s32.totalorder %s267_s24, %s267_s24 }
  0x35   : > { %p1781_p11 = scmp.lt.s32.totalorder %s1779_s11, %s1773_s9 }
  0x36   : > { %p1775_p6 = pnand %p1774_p4, %p121_p5 }
  0x37   : > { %p1782_p12 = por %p1781_p11, %p1780_p9 }
  0x38   : > { %p1776_p7 = pneg %p1775_p6 }
  0x3a   : > { %p1783_p13 = pnand %p1782_p12, %p1776_p7 }
  0x3c   : > { %1786 = shalt.err (!%p1783_p13)
}
  0x3d   : > { %s2471_s2 = sld [smem:[#allocation19_spill]] }
  0x43   : > { %1597 = dma.hbm_to_vmem [thread:$0]  (%p121_p5), %s2471_s2, 16, %s267_s24, [#allocation8]  }
  0x44 PF: > { %p1616_p0 = scmp.lt.s32.totalorder %s1925_s29, 2  ;;  %s280_s17 = sand.u32 1, %s1925_s29  }
  0x45   : > { %s282_s18 = sand.u32 1, %s1913_s26   ;;  %s1400_s20 = sshll.u32 %s1921_s28, 7 }
  0x46   : > { %s2057_s19 = sshll.u32 %s282_s18, 7  ;;  %s2472_s3 = sld [smem:[#allocation20_spill]] }
  0x47   : > { %s284_s9 = scalar_lea.vmem [#allocation9], %s2057_s19  ;;  %p2066_p1 = pnand %p1616_p0, %p2018_p3 }
  0x48   : > { %s290_s11 = sshll.u32 %s284_s9, 4  ;;  %s2070_s15 = scalar_lea.sflag [#allocation5], %s280_s17  ;;  %s291_s11 = int_to_ptr.vmem [resolvable:$true] %s290_s11 }
  0x49   : > { %p1789_p2 = pneg %p2066_p1  ;;  %s1800_s16 = scalar_lea.vmem %s291_s11, 2048 }
  0x4a   : > { %p1801_p4 = scmp.ne.s32.totalorder %s291_s11, %s1800_s16  ;;  %s1931_s18 = smov [#allocation9]  }
  0x4c   : > { %s289_s23 = scalar_lea.hbm %s2472_s3, %s1400_s20  ;;  %p1803_p6 = pnand %p1801_p4, %p1789_p2 }
  0x4d   : > { %s1805_s20 = sshll.u32 %s1931_s18, 4  ;;  %s1806_s20 = int_to_ptr.vmem [resolvable:$false] %s1805_s20 }
  0x4e   : > { %p1804_p7 = pneg %p1803_p6  ;;  %s1807_s10 = scalar_lea.vmem %s1806_s20, 4096 }
  0x4f   : > { %p1808_p3 = scmp.lt.s32.totalorder %s291_s11, %s1806_s20  ;;  %p1809_p9 = scmp.lt.s32.totalorder %s1807_s10, %s1800_s16 }
  0x51   : > { %p1810_p11 = por %p1809_p9, %p1808_p3 }
  0x53   : > { %p1811_p12 = pnand %p1810_p11, %p1804_p7 }
  0x55   : > { %1814 = shalt.err (!%p1811_p12)
}
  0x56   : > { %s1932_s21 = smov 256   ;;  %s1933_s17 = smov 128  }
  0x57   : > { %s1934_s22 = smov 8   ;;  %s1419_s9 = sshll.u32 %s1921_s28, 11 }
  0x58   : > { %1611 = dma.hbm_to_vmem [thread:$0]  (!%p2066_p1), %s289_s23, 2048, %s291_s11, %s2070_s15, %s1932_s21, %s1933_s17, %s1934_s22  }
  0x59   : > { %s316_s2 = scalar_lea.hbm %s2458_s5, %s1419_s9  ;;  %s310_s20 = scalar_lea.vmem [#allocation10], %s2057_s19 }
  0x5a   : > { %s317_s16 = sshll.u32 %s310_s20, 4  ;;  %s1935_s3 = smov [#allocation10]   ;;  %s318_s16 = int_to_ptr.vmem [resolvable:$true] %s317_s16 }
  0x5b   : > { %s1828_s10 = scalar_lea.vmem %s318_s16, 2048  ;;  %s1833_s8 = sshll.u32 %s1935_s3, 4  ;;  %s1834_s8 = int_to_ptr.vmem [resolvable:$false] %s1833_s8 }
  0x5c   : > { %p1829_p13 = scmp.ne.s32.totalorder %s318_s16, %s1828_s10  ;;  %s1835_s13 = scalar_lea.vmem %s1834_s8, 4096 }
  0x5d   : > { %p1836_p6 = scmp.lt.s32.totalorder %s318_s16, %s1834_s8  ;;  %p1837_p7 = scmp.lt.s32.totalorder %s1835_s13, %s1828_s10 }
  0x5e   : > { %p1831_p0 = pnand %p1829_p13, %p1789_p2 }
  0x5f   : > { %p1838_p3 = por %p1837_p7, %p1836_p6 }
  0x60   : > { %p1832_p4 = pneg %p1831_p0 }
  0x62   : > { %p1839_p9 = pnand %p1838_p3, %p1832_p4 }
  0x64   : > { %1842 = shalt.err (!%p1839_p9)
}
  0x65   : > { %1614 = dma.hbm_to_vmem [thread:$0]  (!%p2066_p1), %s316_s2, 2048, %s318_s16, %s2070_s15, %s1933_s17, %s1933_s17, %s1934_s22  }
  0x66   : > { %329 = sbr.rel (%p2037_p10) target bundleno = 983 (0x3d7), region = 48 }
  0x6b   : > { %1888 = dma.done.wait (%p121_p5), [#allocation5], 2048  }
  0x6c   : > { %1890 = vsyncadd (%p121_p5), [#allocation5], 4294965248 }
  0x6d   : > { %1892 = dma.done.wait (%p121_p5), [#allocation8], 16  }
  0x6e   : > { %1894 = vsyncadd (%p121_p5), [#allocation8], 4294967280  ;;  %s339_s0 = sand.u32 1, %s2009_s30   ;;  %s341_s2 = sand.u32 1, %s1909_s25  }
  0x6f   : > { %s1407_s3 = sshll.u32 %s341_s2, 7  ;;  %s340_s8 = scalar_lea.sflag [#allocation5], %s339_s0 }
  0x70   : > { %s2103_s13 = scalar_lea.vmem [#allocation9], %s1407_s3 }
  0x71   : > { %1896 = dma.done.wait (%p2029_p8), %s340_s8, 4096  }
  0x72   : > { %1898 = vsyncadd (%p2029_p8), %s340_s8, 4294963200  ;;  %p389_p10 = scmp.lt.s32.totalorder %s1917_s27, 1  ;;  %s2117_s24 = scalar_lea.vmem [#allocation10], %s1407_s3 }
  0x73   : > { %p1409_p5 = scmp.ne.s32.totalorder %s1917_s27, 0 }
  0x74   : > { %s2111_s14 = scalar_select %p389_p10, %s1917_s27, 1 }
  0x75   : > { %399 = sbr.rel (%p1409_p5) target bundleno = 462 (0x1ce), region = 68 }
  0x76   : > { %s391_s11 = scalar_lea.vmem %s2457_s4, %s2111_s14 }
  0x7a   : > { %v400_v0 = vld [vmem:[#allocation4] sm:$0xff]  ;;  %v402_v1 = vld [vmem:[#allocation4 + $0x10] sm:$0xff]  ;;  %v401_v2 = vld [vmem:[#allocation4 + $0x8] sm:$0xff] }
  0x7b   : > { %416 = vadd.xlane.f32.xlu0 %v400_v0  ;;  %420 = vadd.xlane.f32.xlu1 %v402_v1  ;;  %v403_v3 = vld [vmem:[#allocation4 + $0x18] sm:$0xff]  ;;  %v404_v4 = vld [vmem:[#allocation4 + $0x20] sm:$0xff]  ;;  %v405_v5 = vld [vmem:[#allocation4 + $0x28] sm:$0xff] }
  0x7c   : > { %v406_v6 = vld [vmem:[#allocation4 + $0x30] sm:$0xff]  ;;  %v407_v7 = vld [vmem:[#allocation4 + $0x38] sm:$0xff]  ;;  %v408_v8 = vld [vmem:[#allocation4 + $0x40] sm:$0xff] }
  0x7d   : > { %v409_v9 = vld [vmem:[#allocation4 + $0x48] sm:$0xff]  ;;  %v410_v10 = vld [vmem:[#allocation4 + $0x50] sm:$0xff]  ;;  %v2120_v11 = vld [vmem:[#allocation4 + $0x58] sm:$0xff] }
  0x7e   : > { %v2123_v12 = vld [vmem:[#allocation4 + $0x60] sm:$0xff]  ;;  %v2125_v13 = vld [vmem:[#allocation4 + $0x68] sm:$0xff]  ;;  %v2129_v14 = vld [vmem:[#allocation4 + $0x70] sm:$0xff] }
  0x7f   : > { %418 = vadd.xlane.f32.xlu0 %v401_v2  ;;  %422 = vadd.xlane.f32.xlu1 %v403_v3  ;;  %v2131_v15 = vld [vmem:[#allocation4 + $0x78] sm:$0xff] }
  0x83   : > { %424 = vadd.xlane.f32.xlu0 %v404_v4  ;;  %426 = vadd.xlane.f32.xlu1 %v405_v5 }
  0x87   : > { %428 = vadd.xlane.f32.xlu0 %v406_v6  ;;  %430 = vadd.xlane.f32.xlu1 %v407_v7 }
  0x8b   : > { %432 = vadd.xlane.f32.xlu0 %v408_v8  ;;  %434 = vadd.xlane.f32.xlu1 %v409_v9 }
  0x8f   : > { %436 = vadd.xlane.f32.xlu0 %v410_v10  ;;  %438 = vadd.xlane.f32.xlu1 %v2120_v11 }
  0x93   : > { %440 = vadd.xlane.f32.xlu0 %v2123_v12  ;;  %442 = vadd.xlane.f32.xlu1 %v2125_v13 }
  0x97   : > { %444 = vadd.xlane.f32.xlu0 %v2129_v14  ;;  %446 = vadd.xlane.f32.xlu1 %v2131_v15 }
 0x104   : > { %v417_v16 = vpop.xlane.xlu0 %416  ;;  %v421_v17 = vpop.xlane.xlu1 %420 }
 0x105   : > { %v449_v18 = vmul.f32 0.0078125, %v417_v16  ;;  %v451_v19 = vmul.f32 0.0078125, %v421_v17 }
 0x107   : > { %v2135_v20 = vsub.f32 %v400_v0, %v449_v18  ;;  %v2137_v21 = vsub.f32 %v402_v1, %v451_v19  ;;  %v1936_v18 = vmov 0.0  }
 0x108   : > { %v419_v22 = vpop.xlane.xlu0 %418  ;;  %v423_v23 = vpop.xlane.xlu1 %422  ;;  %655 = vst [vmem:[#allocation3 + $0x28] sm:$0xff] %v1936_v18  ;;  %656 = vst [vmem:[#allocation3 + $0x68] sm:$0xff] %v1936_v18 }
 0x109   : > { %v450_v24 = vmul.f32 0.0078125, %v419_v22  ;;  %v481_v25 = vmul.f32 %v2135_v20, %v2135_v20  ;;  %v452_v26 = vmul.f32 0.0078125, %v423_v23  ;;  %v483_v29 = vmul.f32 %v2137_v21, %v2137_v21  ;;  %657 = vst [vmem:[#allocation3 + $0x10] sm:$0xff] %v1936_v18  ;;  %658 = vst [vmem:[#allocation3 + $0x40] sm:$0xff] %v1936_v18 }
 0x10a   : > { %659 = vst [vmem:[#allocation3 + $0x48] sm:$0xff] %v1936_v18  ;;  %660 = vst [vmem:[#allocation3 + $0x30] sm:$0xff] %v1936_v18 }
 0x10b   : > { %v2141_v27 = vsub.f32 %v401_v2, %v450_v24  ;;  %497 = vadd.xlane.f32.xlu0 %v481_v25  ;;  %v2143_v28 = vsub.f32 %v403_v3, %v452_v26  ;;  %661 = vst [vmem:[#allocation3 + $0x70] sm:$0xff] %v1936_v18  ;;  %662 = vst [vmem:[#allocation3 + $0x38] sm:$0xff] %v1936_v18 }
 0x10c   : > { %v425_v30 = vpop.xlane.xlu0 %424  ;;  %v427_v31 = vpop.xlane.xlu1 %426  ;;  %663 = vst [vmem:[#allocation3 + $0x20] sm:$0xff] %v1936_v18  ;;  %664 = vst [vmem:[#allocation3 + $0x78] sm:$0xff] %v1936_v18 }
 0x10d   : > { %v453_v32 = vmul.f32 0.0078125, %v425_v30  ;;  %v482_v33 = vmul.f32 %v2141_v27, %v2141_v27  ;;  %v454_v34 = vmul.f32 0.0078125, %v427_v31  ;;  %v484_v37 = vmul.f32 %v2143_v28, %v2143_v28  ;;  %665 = vst [vmem:[#allocation3 + $0x18] sm:$0xff] %v1936_v18  ;;  %666 = vst [vmem:[#allocation3 + $0x58] sm:$0xff] %v1936_v18 }
 0x10e   : > { %667 = vst [vmem:[#allocation3] sm:$0xff] %v1936_v18  ;;  %668 = vst [vmem:[#allocation3 + $0x8] sm:$0xff] %v1936_v18 }
 0x10f   : > { %v2149_v35 = vsub.f32 %v404_v4, %v453_v32  ;;  %501 = vadd.xlane.f32.xlu0 %v483_v29  ;;  %499 = vadd.xlane.f32.xlu1 %v482_v33  ;;  %v2151_v36 = vsub.f32 %v405_v5, %v454_v34  ;;  %669 = vst [vmem:[#allocation3 + $0x60] sm:$0xff] %v1936_v18  ;;  %670 = vst [vmem:[#allocation3 + $0x50] sm:$0xff] %v1936_v18 }
 0x110   : > { %v429_v38 = vpop.xlane.xlu0 %428  ;;  %v431_v39 = vpop.xlane.xlu1 %430 }
 0x111   : > { %v455_v40 = vmul.f32 0.0078125, %v429_v38  ;;  %v485_v41 = vmul.f32 %v2149_v35, %v2149_v35  ;;  %v456_v42 = vmul.f32 0.0078125, %v431_v39  ;;  %v486_v45 = vmul.f32 %v2151_v36, %v2151_v36 }
 0x113   : > { %v2157_v43 = vsub.f32 %v406_v6, %v455_v40  ;;  %503 = vadd.xlane.f32.xlu1 %v484_v37  ;;  %505 = vadd.xlane.f32.xlu0 %v485_v41  ;;  %v2159_v44 = vsub.f32 %v407_v7, %v456_v42 }
 0x114   : > { %v433_v46 = vpop.xlane.xlu0 %432  ;;  %v435_v47 = vpop.xlane.xlu1 %434 }
 0x115   : > { %v457_v48 = vmul.f32 0.0078125, %v433_v46  ;;  %v487_v49 = vmul.f32 %v2157_v43, %v2157_v43  ;;  %v458_v50 = vmul.f32 0.0078125, %v435_v47  ;;  %v488_v53 = vmul.f32 %v2159_v44, %v2159_v44 }
 0x117   : > { %v2165_v51 = vsub.f32 %v408_v8, %v457_v48  ;;  %507 = vadd.xlane.f32.xlu1 %v486_v45  ;;  %509 = vadd.xlane.f32.xlu0 %v487_v49  ;;  %v2167_v52 = vsub.f32 %v409_v9, %v458_v50 }
 0x118   : > { %v437_v54 = vpop.xlane.xlu0 %436  ;;  %v439_v55 = vpop.xlane.xlu1 %438 }
 0x119   : > { %v459_v56 = vmul.f32 0.0078125, %v437_v54  ;;  %v489_v57 = vmul.f32 %v2165_v51, %v2165_v51  ;;  %v460_v58 = vmul.f32 0.0078125, %v439_v55  ;;  %v490_v61 = vmul.f32 %v2167_v52, %v2167_v52 }
 0x11b   : > { %v2173_v59 = vsub.f32 %v410_v10, %v459_v56  ;;  %511 = vadd.xlane.f32.xlu1 %v488_v53  ;;  %513 = vadd.xlane.f32.xlu0 %v489_v57  ;;  %v2176_v60 = vsub.f32 %v2120_v11, %v460_v58  ;;  %v2207_v53 = vld [vmem:[%s2454_s1] ss:$0 sm:$0xff] }
 0x11c   : > { %v441_v62 = vpop.xlane.xlu0 %440  ;;  %v443_v63 = vpop.xlane.xlu1 %442  ;;  %v2210_v57 = vld [vmem:[#allocation7] ss:$0 sm:$0xff] }
 0x11d   : > { %v461_v0 = vmul.f32 0.0078125, %v441_v62  ;;  %v491_v1 = vmul.f32 %v2173_v59, %v2173_v59  ;;  %v462_v2 = vmul.f32 0.0078125, %v443_v63  ;;  %v492_v5 = vmul.f32 %v2176_v60, %v2176_v60 }
 0x11f   : > { %v2183_v3 = vsub.f32 %v2123_v12, %v461_v0  ;;  %515 = vadd.xlane.f32.xlu1 %v490_v61  ;;  %517 = vadd.xlane.f32.xlu0 %v491_v1  ;;  %v2186_v4 = vsub.f32 %v2125_v13, %v462_v2 }
 0x120   : > { %v445_v6 = vpop.xlane.xlu0 %444  ;;  %v447_v7 = vpop.xlane.xlu1 %446 }
 0x121   : > { %v463_v8 = vmul.f32 0.0078125, %v445_v6  ;;  %v493_v9 = vmul.f32 %v2183_v3, %v2183_v3  ;;  %v464_v10 = vmul.f32 0.0078125, %v447_v7  ;;  %v494_v13 = vmul.f32 %v2186_v4, %v2186_v4 }
 0x123   : > { %v2193_v11 = vsub.f32 %v2129_v14, %v463_v8  ;;  %519 = vadd.xlane.f32.xlu1 %v492_v5  ;;  %521 = vadd.xlane.f32.xlu0 %v493_v9  ;;  %v2196_v12 = vsub.f32 %v2131_v15, %v464_v10 }
 0x125   : > { %v495_v16 = vmul.f32 %v2193_v11, %v2193_v11  ;;  %v496_v17 = vmul.f32 %v2196_v12, %v2196_v12 }
 0x127   : > { %523 = vadd.xlane.f32.xlu1 %v494_v13  ;;  %525 = vadd.xlane.f32.xlu0 %v495_v16 }
 0x12b   : > { %527 = vadd.xlane.f32.xlu1 %v496_v17 }
 0x194   : > { %v498_v14 = vpop.xlane.xlu0 %497 }
 0x195   : > { %v529_v15 = vmul.f32 0.0078125, %v498_v14 }
 0x197   : > { %v545_v19 = vadd.f32 1e-05, %v529_v15 }
 0x198   : > { %v500_v22 = vpop.xlane.xlu1 %499  ;;  %v502_v23 = vpop.xlane.xlu0 %501 }
 0x199   : > { %1679 = vrsqrt.f32 %v545_v19  ;;  %v530_v24 = vmul.f32 0.0078125, %v500_v22  ;;  %v531_v25 = vmul.f32 0.0078125, %v502_v23 }
 0x19b   : > { %v546_v26 = vadd.f32 1e-05, %v530_v24  ;;  %v547_v29 = vadd.f32 1e-05, %v531_v25 }
 0x19c   : > { %v504_v30 = vpop.xlane.xlu1 %503  ;;  %v506_v31 = vpop.xlane.xlu0 %505 }
 0x19d   : > { %1681 = vrsqrt.f32 %v546_v26  ;;  %v532_v32 = vmul.f32 0.0078125, %v504_v30  ;;  %v533_v33 = vmul.f32 0.0078125, %v506_v31 }
 0x19e   : > { %1683 = vrsqrt.f32 %v547_v29 }
 0x19f   : > { %v548_v34 = vadd.f32 1e-05, %v532_v32  ;;  %v549_v37 = vadd.f32 1e-05, %v533_v33 }
 0x1a0   : > { %v508_v38 = vpop.xlane.xlu1 %507  ;;  %v510_v39 = vpop.xlane.xlu0 %509 }
 0x1a1   : > { %1685 = vrsqrt.f32 %v548_v34  ;;  %v534_v40 = vmul.f32 0.0078125, %v508_v38  ;;  %v535_v41 = vmul.f32 0.0078125, %v510_v39 }
 0x1a2   : > { %1687 = vrsqrt.f32 %v549_v37 }
 0x1a3   : > { %v550_v42 = vadd.f32 1e-05, %v534_v40  ;;  %v551_v45 = vadd.f32 1e-05, %v535_v41 }
 0x1a4   : > { %v512_v46 = vpop.xlane.xlu1 %511  ;;  %v514_v47 = vpop.xlane.xlu0 %513 }
 0x1a5   : > { %1689 = vrsqrt.f32 %v550_v42  ;;  %v536_v48 = vmul.f32 0.0078125, %v512_v46  ;;  %v537_v49 = vmul.f32 0.0078125, %v514_v47 }
 0x1a6   : > { %v1680_v50 = vpop.eup %1679  ;;  %1691 = vrsqrt.f32 %v551_v45 }
 0x1a7   : > { %v577_v54 = vmul.f32 %v1680_v50, %v2135_v20  ;;  %v552_v55 = vadd.f32 1e-05, %v536_v48  ;;  %v553_v56 = vadd.f32 1e-05, %v537_v49 }
 0x1a8   : > { %v516_v58 = vpop.xlane.xlu1 %515  ;;  %v518_v61 = vpop.xlane.xlu0 %517 }
 0x1a9   : > { %v600_v62 = vmul.f32 %v2207_v53, %v577_v54  ;;  %1693 = vrsqrt.f32 %v552_v55  ;;  %v538_v63 = vmul.f32 0.0078125, %v516_v58  ;;  %v539_v0 = vmul.f32 0.0078125, %v518_v61 }
 0x1aa   : > { %v1682_v1 = vpop.eup %1681  ;;  %1695 = vrsqrt.f32 %v553_v56 }
 0x1ab   : > { %v1684_v2 = vpop.eup %1683  ;;  %v623_v5 = vadd.f32 %v2210_v57, %v600_v62  ;;  %v578_v6 = vmul.f32 %v1682_v1, %v2141_v27  ;;  %v554_v7 = vadd.f32 1e-05, %v538_v63  ;;  %v555_v20 = vadd.f32 1e-05, %v539_v0 }
 0x1ac   : > { %v579_v8 = vmul.f32 %v1684_v2, %v2137_v21  ;;  %v520_v9 = vpop.xlane.xlu1 %519  ;;  %v522_v10 = vpop.xlane.xlu0 %521 }
 0x1ad   : > { %639 = vst [vmem:[#allocation2 + $0x30] sm:$0xff] %v623_v5  ;;  %v601_v13 = vmul.f32 %v2207_v53, %v578_v6  ;;  %1697 = vrsqrt.f32 %v554_v7  ;;  %v540_v16 = vmul.f32 0.0078125, %v520_v9  ;;  %v541_v17 = vmul.f32 0.0078125, %v522_v10 }
 0x1ae   : > { %v1686_v18 = vpop.eup %1685  ;;  %v602_v14 = vmul.f32 %v2207_v53, %v579_v8  ;;  %1699 = vrsqrt.f32 %v555_v20 }
 0x1af   : > { %v1688_v15 = vpop.eup %1687  ;;  %v624_v19 = vadd.f32 %v2210_v57, %v601_v13  ;;  %v580_v27 = vmul.f32 %v1686_v18, %v2143_v28  ;;  %v556_v22 = vadd.f32 1e-05, %v540_v16  ;;  %v557_v23 = vadd.f32 1e-05, %v541_v17 }
 0x1b0   : > { %v625_v21 = vadd.f32 %v2210_v57, %v602_v14  ;;  %v581_v24 = vmul.f32 %v1688_v15, %v2149_v35  ;;  %v524_v25 = vpop.xlane.xlu1 %523  ;;  %v526_v26 = vpop.xlane.xlu0 %525 }
 0x1b1   : > { %640 = vst [vmem:[#allocation2] sm:$0xff] %v624_v19  ;;  %v603_v29 = vmul.f32 %v2207_v53, %v580_v27  ;;  %1701 = vrsqrt.f32 %v556_v22  ;;  %v542_v30 = vmul.f32 0.0078125, %v524_v25  ;;  %v543_v31 = vmul.f32 0.0078125, %v526_v26 }
 0x1b2   : > { %v1690_v32 = vpop.eup %1689  ;;  %641 = vst [vmem:[#allocation2 + $0x58] sm:$0xff] %v625_v21  ;;  %v604_v33 = vmul.f32 %v2207_v53, %v581_v24  ;;  %1703 = vrsqrt.f32 %v557_v23 }
 0x1b3   : > { %v1692_v28 = vpop.eup %1691  ;;  %v626_v34 = vadd.f32 %v2210_v57, %v603_v29  ;;  %v582_v37 = vmul.f32 %v1690_v32, %v2151_v36  ;;  %v558_v38 = vadd.f32 1e-05, %v542_v30  ;;  %v559_v35 = vadd.f32 1e-05, %v543_v31 }
 0x1b4   : > { %v627_v39 = vadd.f32 %v2210_v57, %v604_v33  ;;  %v583_v40 = vmul.f32 %v1692_v28, %v2157_v43  ;;  %v528_v41 = vpop.xlane.xlu1 %527 }
 0x1b5   : > { %642 = vst [vmem:[#allocation2 + $0x18] sm:$0xff] %v626_v34  ;;  %v605_v42 = vmul.f32 %v2207_v53, %v582_v37  ;;  %1705 = vrsqrt.f32 %v558_v38  ;;  %v544_v45 = vmul.f32 0.0078125, %v528_v41 }
 0x1b6   : > { %v1694_v46 = vpop.eup %1693  ;;  %643 = vst [vmem:[#allocation2 + $0x50] sm:$0xff] %v627_v39  ;;  %v606_v47 = vmul.f32 %v2207_v53, %v583_v40  ;;  %1707 = vrsqrt.f32 %v559_v35 }
 0x1b7   : > { %v1696_v48 = vpop.eup %1695  ;;  %v628_v36 = vadd.f32 %v2210_v57, %v605_v42  ;;  %v584_v49 = vmul.f32 %v1694_v46, %v2159_v44  ;;  %v560_v50 = vadd.f32 1e-05, %v544_v45 }
 0x1b8   : > { %v629_v54 = vadd.f32 %v2210_v57, %v606_v47  ;;  %v585_v43 = vmul.f32 %v1696_v48, %v2165_v51 }
 0x1b9   : > { %644 = vst [vmem:[#allocation2 + $0x68] sm:$0xff] %v628_v36  ;;  %v607_v55 = vmul.f32 %v2207_v53, %v584_v49  ;;  %1709 = vrsqrt.f32 %v560_v50 }
 0x1ba   : > { %v1698_v56 = vpop.eup %1697  ;;  %645 = vst [vmem:[#allocation2 + $0x8] sm:$0xff] %v629_v54  ;;  %v608_v58 = vmul.f32 %v2207_v53, %v585_v43 }
 0x1bb   : > { %v1700_v61 = vpop.eup %1699  ;;  %v630_v62 = vadd.f32 %v2210_v57, %v607_v55  ;;  %v586_v63 = vmul.f32 %v1698_v56, %v2167_v52 }
 0x1bc   : > { %v631_v44 = vadd.f32 %v2210_v57, %v608_v58  ;;  %v587_v0 = vmul.f32 %v1700_v61, %v2173_v59 }
 0x1bd   : > { %646 = vst [vmem:[#allocation2 + $0x48] sm:$0xff] %v630_v62  ;;  %v609_v51 = vmul.f32 %v2207_v53, %v586_v63 }
 0x1be   : > { %v1702_v1 = vpop.eup %1701  ;;  %647 = vst [vmem:[#allocation2 + $0x40] sm:$0xff] %v631_v44  ;;  %v610_v2 = vmul.f32 %v2207_v53, %v587_v0 }
 0x1bf   : > { %v1704_v5 = vpop.eup %1703  ;;  %v632_v6 = vadd.f32 %v2210_v57, %v609_v51  ;;  %v588_v7 = vmul.f32 %v1702_v1, %v2176_v60 }
 0x1c0   : > { %v633_v20 = vadd.f32 %v2210_v57, %v610_v2  ;;  %v589_v52 = vmul.f32 %v1704_v5, %v2183_v3 }
 0x1c1   : > { %648 = vst [vmem:[#allocation2 + $0x20] sm:$0xff] %v632_v6  ;;  %v611_v8 = vmul.f32 %v2207_v53, %v588_v7 }
 0x1c2   : > { %v1706_v59 = vpop.eup %1705  ;;  %649 = vst [vmem:[#allocation2 + $0x10] sm:$0xff] %v633_v20  ;;  %v612_v9 = vmul.f32 %v2207_v53, %v589_v52 }
 0x1c3   : > { %v1708_v10 = vpop.eup %1707  ;;  %v634_v13 = vadd.f32 %v2210_v57, %v611_v8  ;;  %v590_v16 = vmul.f32 %v1706_v59, %v2186_v4 }
 0x1c4   : > { %v635_v17 = vadd.f32 %v2210_v57, %v612_v9  ;;  %v591_v60 = vmul.f32 %v1708_v10, %v2193_v11 }
 0x1c5   : > { %650 = vst [vmem:[#allocation2 + $0x38] sm:$0xff] %v634_v13  ;;  %v613_v18 = vmul.f32 %v2207_v53, %v590_v16 }
 0x1c6   : > { %v1710_v3 = vpop.eup %1709  ;;  %651 = vst [vmem:[#allocation2 + $0x60] sm:$0xff] %v635_v17  ;;  %v614_v14 = vmul.f32 %v2207_v53, %v591_v60 }
 0x1c7   : > { %v636_v15 = vadd.f32 %v2210_v57, %v613_v18  ;;  %v592_v19 = vmul.f32 %v1710_v3, %v2196_v12 }
 0x1c8   : > { %v637_v27 = vadd.f32 %v2210_v57, %v614_v14 }
 0x1c9   : > { %652 = vst [vmem:[#allocation2 + $0x70] sm:$0xff] %v636_v15  ;;  %v615_v4 = vmul.f32 %v2207_v53, %v592_v19 }
 0x1ca   : > { %653 = vst [vmem:[#allocation2 + $0x78] sm:$0xff] %v637_v27 }
 0x1cb   : > { %v638_v22 = vadd.f32 %v2210_v57, %v615_v4 }
 0x1cd   : > { %654 = vst [vmem:[#allocation2 + $0x28] sm:$0xff] %v638_v22 }
 0x1ce PF: > { %v702_v11 = vld [vmem:[%s2103_s13 + $0x78] sm:$0xff]  ;;  %v701_v23 = vld [vmem:[%s2103_s13 + $0x70] sm:$0xff]  ;;  %v700_v12 = vld [vmem:[%s2103_s13 + $0x68] sm:$0xff]  ;;  %p1413_p8 = scmp.ne.s32.totalorder %s1917_s27, 1 }
 0x1cf   : > { %1484 = vmatprep.subr.mxu0 %v702_v11  ;;  %v699_v53 = vld [vmem:[%s2103_s13 + $0x60] sm:$0xff]  ;;  %v671_v57 = vld [vmem:[#allocation2 + $0x30] sm:$0xff]  ;;  %v698_v21 = vld [vmem:[%s2103_s13 + $0x58] sm:$0xff] }
 0x1d0   : > { %1485 = vmatpush3.msra.mxu0 %v702_v11  ;;  %1516 = vmatprep.mubr.f32.mxu0 %v671_v57  ;;  %v697_v24 = vld [vmem:[%s2103_s13 + $0x50] sm:$0xff]  ;;  %v696_v25 = vld [vmem:[%s2103_s13 + $0x48] sm:$0xff]  ;;  %v695_v26 = vld [vmem:[%s2103_s13 + $0x40] sm:$0xff] }
 0x1d1   : > { %1486 = vmatprep.subr.mxu0 %v701_v23  ;;  %v694_v29 = vld [vmem:[%s2103_s13 + $0x38] sm:$0xff]  ;;  %v693_v30 = vld [vmem:[%s2103_s13 + $0x30] sm:$0xff]  ;;  %v692_v31 = vld [vmem:[%s2103_s13 + $0x28] sm:$0xff] }
 0x1d2   : > { %1487 = vmatpush3.msra.mxu0 %v701_v23  ;;  %v691_v32 = vld [vmem:[%s2103_s13 + $0x20] sm:$0xff]  ;;  %v690_v33 = vld [vmem:[%s2103_s13 + $0x18] sm:$0xff]  ;;  %v689_v28 = vld [vmem:[%s2103_s13 + $0x10] sm:$0xff] }
 0x1d3   : > { %1488 = vmatprep.subr.mxu0 %v700_v12  ;;  %v688_v34 = vld [vmem:[%s2103_s13 + $0x8] sm:$0xff]  ;;  %v687_v37 = vld [vmem:[%s2103_s13] sm:$0xff]  ;;  %v673_v35 = vld [vmem:[#allocation2 + $0x58] sm:$0xff] }
 0x1d4   : > { %1489 = vmatpush3.msra.mxu0 %v700_v12  ;;  %v672_v38 = vld [vmem:[#allocation2] sm:$0xff]  ;;  %v674_v39 = vld [vmem:[#allocation2 + $0x18] sm:$0xff]  ;;  %v675_v40 = vld [vmem:[#allocation2 + $0x50] sm:$0xff] }
 0x1d5   : > { %1490 = vmatprep.subr.mxu0 %v699_v53  ;;  %v676_v41 = vld [vmem:[#allocation2 + $0x68] sm:$0xff]  ;;  %v679_v46 = vld [vmem:[#allocation2 + $0x40] sm:$0xff]  ;;  %v681_v48 = vld [vmem:[#allocation2 + $0x10] sm:$0xff] }
 0x1d6   : > { %1491 = vmatpush3.msra.mxu0 %v699_v53  ;;  %v677_v42 = vld [vmem:[#allocation2 + $0x8] sm:$0xff]  ;;  %v680_v47 = vld [vmem:[#allocation2 + $0x20] sm:$0xff]  ;;  %v682_v36 = vld [vmem:[#allocation2 + $0x38] sm:$0xff] }
 0x1d7   : > { %1492 = vmatprep.subr.mxu0 %v698_v21  ;;  %v678_v45 = vld [vmem:[#allocation2 + $0x48] sm:$0xff]  ;;  %v683_v49 = vld [vmem:[#allocation2 + $0x60] sm:$0xff]  ;;  %v684_v50 = vld [vmem:[#allocation2 + $0x70] sm:$0xff] }
 0x1d8   : > { %1493 = vmatpush3.msra.mxu0 %v698_v21  ;;  %v685_v54 = vld [vmem:[#allocation2 + $0x78] sm:$0xff]  ;;  %v686_v43 = vld [vmem:[#allocation2 + $0x28] sm:$0xff]  ;;  %v2296_v8 = vld [vmem:[%s391_s11] ss:$0 sm:$0xff] }
 0x1d9   : > { %1494 = vmatprep.subr.mxu0 %v697_v24  ;;  %v1030_v55 = vld [vmem:[%s2117_s24 + $0x78] sm:$0xff]  ;;  %v1029_v56 = vld [vmem:[%s2117_s24 + $0x70] sm:$0xff]  ;;  %v1028_v58 = vld [vmem:[%s2117_s24 + $0x68] sm:$0xff] }
 0x1da   : > { %1495 = vmatpush3.msra.mxu0 %v697_v24  ;;  %1540 = vmatprep.subr.mxu1 %v1030_v55  ;;  %v1027_v61 = vld [vmem:[%s2117_s24 + $0x60] sm:$0xff]  ;;  %v1026_v62 = vld [vmem:[%s2117_s24 + $0x58] sm:$0xff]  ;;  %v1025_v63 = vld [vmem:[%s2117_s24 + $0x50] sm:$0xff] }
 0x1db   : > { %1496 = vmatprep.subr.mxu0 %v696_v25  ;;  %1541 = vmatpush3.msra.mxu1 %v1030_v55  ;;  %v1024_v44 = vld [vmem:[%s2117_s24 + $0x48] sm:$0xff]  ;;  %v1023_v0 = vld [vmem:[%s2117_s24 + $0x40] sm:$0xff]  ;;  %v1022_v51 = vld [vmem:[%s2117_s24 + $0x38] sm:$0xff] }
 0x1dc   : > { %1497 = vmatpush3.msra.mxu0 %v696_v25  ;;  %1542 = vmatprep.subr.mxu1 %v1029_v56  ;;  %v1021_v1 = vld [vmem:[%s2117_s24 + $0x30] sm:$0xff]  ;;  %v1020_v2 = vld [vmem:[%s2117_s24 + $0x28] sm:$0xff]  ;;  %v1019_v5 = vld [vmem:[%s2117_s24 + $0x20] sm:$0xff] }
 0x1dd   : > { %1498 = vmatprep.subr.mxu0 %v695_v26  ;;  %1543 = vmatpush3.msra.mxu1 %v1029_v56  ;;  %v1018_v6 = vld [vmem:[%s2117_s24 + $0x18] sm:$0xff]  ;;  %v1017_v7 = vld [vmem:[%s2117_s24 + $0x10] sm:$0xff]  ;;  %v1016_v20 = vld [vmem:[%s2117_s24 + $0x8] sm:$0xff] }
 0x1de   : > { %1499 = vmatpush3.msra.mxu0 %v695_v26  ;;  %1544 = vmatprep.subr.mxu1 %v1028_v58  ;;  %v1015_v52 = vld [vmem:[%s2117_s24] sm:$0xff] }
 0x1df   : > { %1500 = vmatprep.subr.mxu0 %v694_v29  ;;  %1545 = vmatpush3.msra.mxu1 %v1028_v58 }
 0x1e0   : > { %1501 = vmatpush3.msra.mxu0 %v694_v29  ;;  %1546 = vmatprep.subr.mxu1 %v1027_v61 }
 0x1e1   : > { %1502 = vmatprep.subr.mxu0 %v693_v30  ;;  %1547 = vmatpush3.msra.mxu1 %v1027_v61 }
 0x1e2   : > { %1503 = vmatpush3.msra.mxu0 %v693_v30  ;;  %1548 = vmatprep.subr.mxu1 %v1026_v62 }
 0x1e3   : > { %1504 = vmatprep.subr.mxu0 %v692_v31  ;;  %1549 = vmatpush3.msra.mxu1 %v1026_v62 }
 0x1e4   : > { %1505 = vmatpush3.msra.mxu0 %v692_v31  ;;  %1550 = vmatprep.subr.mxu1 %v1025_v63 }
 0x1e5   : > { %1506 = vmatprep.subr.mxu0 %v691_v32  ;;  %1551 = vmatpush3.msra.mxu1 %v1025_v63 }
 0x1e6   : > { %1507 = vmatpush3.msra.mxu0 %v691_v32  ;;  %1552 = vmatprep.subr.mxu1 %v1024_v44 }
 0x1e7   : > { %1508 = vmatprep.subr.mxu0 %v690_v33  ;;  %1553 = vmatpush3.msra.mxu1 %v1024_v44 }
 0x1e8   : > { %1509 = vmatpush3.msra.mxu0 %v690_v33  ;;  %1554 = vmatprep.subr.mxu1 %v1023_v0 }
 0x1e9   : > { %1510 = vmatprep.subr.mxu0 %v689_v28  ;;  %1555 = vmatpush3.msra.mxu1 %v1023_v0 }
 0x1ea   : > { %1511 = vmatpush3.msra.mxu0 %v689_v28  ;;  %1556 = vmatprep.subr.mxu1 %v1022_v51 }
 0x1eb   : > { %1512 = vmatprep.subr.mxu0 %v688_v34  ;;  %1557 = vmatpush3.msra.mxu1 %v1022_v51 }
 0x1ec   : > { %1513 = vmatpush3.msra.mxu0 %v688_v34  ;;  %1558 = vmatprep.subr.mxu1 %v1021_v1 }
 0x1ed   : > { %1514 = vmatprep.subr.mxu0 %v687_v37  ;;  %1559 = vmatpush3.msra.mxu1 %v1021_v1 }
 0x1ee   : > { %1515 = vmatpush3.msra.mxu0 %v687_v37  ;;  %1560 = vmatprep.subr.mxu1 %v1020_v2 }
 0x1ef   : > { %1517 = vmatmul.mubr.f32.vlgmr.msra.gmra.mxu0 %v672_v38  ;;  %1561 = vmatpush3.msra.mxu1 %v1020_v2 }
 0x1f0   : > { %1519 = vmatprep.mubr.f32.mxu0 %v673_v35  ;;  %1562 = vmatprep.subr.mxu1 %v1019_v5 }
 0x1f1   : > { %1563 = vmatpush3.msra.mxu1 %v1019_v5 }
 0x1f2   : > { %1564 = vmatprep.subr.mxu1 %v1018_v6 }
 0x1f3   : > { %1520 = vmatmul.mubr.f32.gmra.mxu0 %v674_v39  ;;  %1565 = vmatpush3.msra.mxu1 %v1018_v6 }
 0x1f4   : > { %1522 = vmatprep.mubr.f32.mxu0 %v675_v40  ;;  %1566 = vmatprep.subr.mxu1 %v1017_v7 }
 0x1f5   : > { %1567 = vmatpush3.msra.mxu1 %v1017_v7 }
 0x1f6   : > { %1568 = vmatprep.subr.mxu1 %v1016_v20 }
 0x1f7   : > { %1523 = vmatmul.mubr.f32.gmra.mxu0 %v676_v41  ;;  %1569 = vmatpush3.msra.mxu1 %v1016_v20 }
 0x1f8   : > { %1525 = vmatprep.mubr.f32.mxu0 %v677_v42  ;;  %1570 = vmatprep.subr.mxu1 %v1015_v52 }
 0x1f9   : > { %1571 = vmatpush3.msra.mxu1 %v1015_v52 }
 0x1fb   : > { %1526 = vmatmul.mubr.f32.gmra.mxu0 %v678_v45 }
 0x1fc   : > { %1528 = vmatprep.mubr.f32.mxu0 %v679_v46 }
 0x1ff   : > { %1529 = vmatmul.mubr.f32.gmra.mxu0 %v680_v47 }
 0x200   : > { %1531 = vmatprep.mubr.f32.mxu0 %v681_v48 }
 0x203   : > { %1532 = vmatmul.mubr.f32.gmra.mxu0 %v682_v36 }
 0x204   : > { %1534 = vmatprep.mubr.f32.mxu0 %v683_v49 }
 0x207   : > { %1535 = vmatmul.mubr.f32.gmra.mxu0 %v684_v50 }
 0x208   : > { %1537 = vmatprep.mubr.f32.mxu0 %v685_v54 }
 0x20b   : > { %1538 = vmatmul.mubr.f32.gmra.mxu0 %v686_v43 }
 0x2af   : > { %v1518_v59 = vpop.f32.mrf.mxu0 }
 0x2b0   : > { %v2299_v9 = vadd.f32 %v1518_v59, %v2296_v8 }
 0x2b1   : > { %v776_v10 = vpop.f32.mrf.mxu0 }
 0x2b2   : > { %v872_v13 = vmul.f32 0.044715, %v2299_v9  ;;  %v2303_v16 = vadd.f32 %v2296_v8, %v776_v10 }
 0x2b3   : > { %v1521_v17 = vpop.f32.mrf.mxu0 }
 0x2b4   : > { %v888_v60 = vmul.f32 %v872_v13, %v2299_v9  ;;  %v2307_v18 = vadd.f32 %v1521_v17, %v2296_v8  ;;  %v871_v3 = vmul.f32 0.044715, %v2303_v16 }
 0x2b5   : > { %v786_v14 = vpop.f32.mrf.mxu0 }
 0x2b6   : > { %v874_v15 = vmul.f32 0.044715, %v2307_v18  ;;  %v2312_v19 = vadd.f32 %v2296_v8, %v786_v14  ;;  %v887_v27 = vmul.f32 %v871_v3, %v2303_v16  ;;  %v904_v4 = vmul.f32 %v888_v60, %v2299_v9 }
 0x2b7   : > { %v1524_v22 = vpop.f32.mrf.mxu0  ;;  %v856_v60 = vmul.f32 0.5, %v2299_v9 }
 0x2b8   : > { %v890_v11 = vmul.f32 %v874_v15, %v2307_v18  ;;  %v873_v23 = vmul.f32 0.044715, %v2312_v19  ;;  %v2319_v12 = vadd.f32 %v1524_v22, %v2296_v8  ;;  %v903_v53 = vmul.f32 %v887_v27, %v2303_v16 }
 0x2b9   : > { %v796_v57 = vpop.f32.mrf.mxu0  ;;  %v920_v21 = vadd.f32 %v904_v4, %v2299_v9 }
 0x2ba   : > { %v889_v24 = vmul.f32 %v873_v23, %v2312_v19  ;;  %v876_v25 = vmul.f32 0.044715, %v2319_v12  ;;  %v2326_v26 = vadd.f32 %v2296_v8, %v796_v57  ;;  %v919_v29 = vadd.f32 %v903_v53, %v2303_v16 }
 0x2bb   : > { %v1527_v30 = vpop.f32.mrf.mxu0  ;;  %v936_v31 = vmul.f32 0.7978846, %v920_v21  ;;  %v906_v32 = vmul.f32 %v890_v11, %v2307_v18  ;;  %v855_v53 = vmul.f32 0.5, %v2303_v16 }
 0x2bc   : > { %v892_v33 = vmul.f32 %v876_v25, %v2319_v12  ;;  %v875_v28 = vmul.f32 0.044715, %v2326_v26  ;;  %v2333_v34 = vadd.f32 %v1527_v30, %v2296_v8  ;;  %v935_v37 = vmul.f32 0.7978846, %v919_v29 }
 0x2bd   : > { %v806_v38 = vpop.f32.mrf.mxu0  ;;  %1711 = vtanh.f32 %v936_v31  ;;  %v905_v35 = vmul.f32 %v889_v24, %v2312_v19  ;;  %v922_v39 = vadd.f32 %v906_v32, %v2307_v18 }
 0x2be   : > { %v891_v40 = vmul.f32 %v875_v28, %v2326_v26  ;;  %v878_v41 = vmul.f32 0.044715, %v2333_v34  ;;  %v2340_v42 = vadd.f32 %v2296_v8, %v806_v38  ;;  %1713 = vtanh.f32 %v935_v37 }
 0x2bf   : > { %v1530_v45 = vpop.f32.mrf.mxu0  ;;  %v921_v46 = vadd.f32 %v905_v35, %v2312_v19  ;;  %v938_v47 = vmul.f32 0.7978846, %v922_v39  ;;  %v908_v48 = vmul.f32 %v892_v33, %v2319_v12 }
 0x2c0   : > { %v894_v36 = vmul.f32 %v878_v41, %v2333_v34  ;;  %v877_v49 = vmul.f32 0.044715, %v2340_v42  ;;  %v2347_v50 = vadd.f32 %v1530_v45, %v2296_v8  ;;  %v907_v54 = vmul.f32 %v891_v40, %v2326_v26 }
 0x2c1   : > { %v816_v43 = vpop.f32.mrf.mxu0  ;;  %v937_v55 = vmul.f32 0.7978846, %v921_v46  ;;  %1715 = vtanh.f32 %v938_v47  ;;  %v924_v56 = vadd.f32 %v908_v48, %v2319_v12 }
 0x2c2   : > { %v893_v58 = vmul.f32 %v877_v49, %v2340_v42  ;;  %v880_v61 = vmul.f32 0.044715, %v2347_v50  ;;  %v2354_v62 = vadd.f32 %v2296_v8, %v816_v43  ;;  %v923_v63 = vadd.f32 %v907_v54, %v2326_v26 }
 0x2c3   : > { %v1533_v44 = vpop.f32.mrf.mxu0  ;;  %1717 = vtanh.f32 %v937_v55  ;;  %v940_v0 = vmul.f32 0.7978846, %v924_v56  ;;  %v910_v51 = vmul.f32 %v894_v36, %v2333_v34 }
 0x2c4   : > { %v896_v1 = vmul.f32 %v880_v61, %v2347_v50  ;;  %v879_v2 = vmul.f32 0.044715, %v2354_v62  ;;  %v2361_v5 = vadd.f32 %v1533_v44, %v2296_v8  ;;  %v939_v6 = vmul.f32 0.7978846, %v923_v63 }
 0x2c5   : > { %v826_v7 = vpop.f32.mrf.mxu0  ;;  %1719 = vtanh.f32 %v940_v0  ;;  %v909_v20 = vmul.f32 %v893_v58, %v2340_v42  ;;  %v926_v52 = vadd.f32 %v910_v51, %v2333_v34  ;;  %v857_v63 = vmul.f32 0.5, %v2312_v19 }
 0x2c6   : > { %v895_v59 = vmul.f32 %v879_v2, %v2354_v62  ;;  %v882_v10 = vmul.f32 0.044715, %v2361_v5  ;;  %v2368_v13 = vadd.f32 %v2296_v8, %v826_v7  ;;  %1721 = vtanh.f32 %v939_v6 }
 0x2c7   : > { %v1536_v17 = vpop.f32.mrf.mxu0  ;;  %v925_v3 = vadd.f32 %v909_v20, %v2340_v42  ;;  %v942_v14 = vmul.f32 0.7978846, %v926_v52  ;;  %v912_v15 = vmul.f32 %v896_v1, %v2347_v50  ;;  %v858_v44 = vmul.f32 0.5, %v2307_v18 }
 0x2c8   : > { %v898_v27 = vmul.f32 %v882_v10, %v2361_v5  ;;  %v881_v4 = vmul.f32 0.044715, %v2368_v13  ;;  %v2376_v22 = vadd.f32 %v1536_v17, %v2296_v8  ;;  %v911_v11 = vmul.f32 %v895_v59, %v2354_v62 }
 0x2c9   : > { %v836_v23 = vpop.f32.mrf.mxu0  ;;  %v941_v57 = vmul.f32 0.7978846, %v925_v3  ;;  %1723 = vtanh.f32 %v942_v14  ;;  %v928_v9 = vadd.f32 %v912_v15, %v2347_v50  ;;  %v859_v20 = vmul.f32 0.5, %v2326_v26 }
 0x2ca   : > { %v1712_v21 = vpop.eup %1711  ;;  %v897_v24 = vmul.f32 %v881_v4, %v2368_v13  ;;  %v884_v25 = vmul.f32 0.044715, %v2376_v22  ;;  %v2384_v29 = vadd.f32 %v2296_v8, %v836_v23  ;;  %v927_v30 = vadd.f32 %v911_v11, %v2354_v62 }
 0x2cb   : > { %v1714_v31 = vpop.eup %1713  ;;  %v1539_v32 = vpop.f32.mrf.mxu0  ;;  %v968_v33 = vadd.f32 1.0, %v1712_v21  ;;  %1725 = vtanh.f32 %v941_v57  ;;  %v944_v28 = vmul.f32 0.7978846, %v928_v9  ;;  %v914_v16 = vmul.f32 %v898_v27, %v2361_v5 }
 0x2cc   : > { %v900_v37 = vmul.f32 %v884_v25, %v2376_v22  ;;  %v883_v38 = vmul.f32 0.044715, %v2384_v29  ;;  %v2391_v35 = vadd.f32 %v1539_v32, %v2296_v8  ;;  %v967_v39 = vadd.f32 1.0, %v1714_v31 }
 0x2cd   : > { %v846_v40 = vpop.f32.mrf.mxu0  ;;  %v984_v41 = vmul.f32 %v968_v33, %v856_v60  ;;  %v943_v45 = vmul.f32 0.7978846, %v927_v30  ;;  %1727 = vtanh.f32 %v944_v28  ;;  %v913_v46 = vmul.f32 %v897_v24, %v2368_v13 }
 0x2ce   : > { %v1716_v47 = vpop.eup %1715  ;;  %v899_v48 = vmul.f32 %v883_v38, %v2384_v29  ;;  %v886_v36 = vmul.f32 0.044715, %v2391_v35  ;;  %v2397_v49 = vadd.f32 %v2296_v8, %v846_v40  ;;  %v983_v54 = vmul.f32 %v967_v39, %v855_v53 }
 0x2cf   : > { %v970_v43 = vadd.f32 1.0, %v1716_v47  ;;  %1729 = vtanh.f32 %v943_v45  ;;  %v929_v55 = vadd.f32 %v913_v46, %v2368_v13  ;;  %v930_v56 = vadd.f32 %v914_v16, %v2361_v5 }
 0x2d0   : > { %v1718_v58 = vpop.eup %1717  ;;  %v885_v61 = vmul.f32 0.044715, %v2397_v49  ;;  %1572 = vmatprep.mubr.f32.mxu1 %v983_v54  ;;  %v915_v0 = vmul.f32 %v899_v48, %v2384_v29  ;;  %v902_v8 = vmul.f32 %v886_v36, %v2391_v35  ;;  %v916_v59 = vmul.f32 %v900_v37, %v2376_v22 }
 0x2d1   : > { %1573 = vmatmul.mubr.f32.vlgmr.msra.gmra.mxu1 %v984_v41  ;;  %v969_v51 = vadd.f32 1.0, %v1718_v58  ;;  %v945_v1 = vmul.f32 0.7978846, %v929_v55  ;;  %v946_v2 = vmul.f32 0.7978846, %v930_v56  ;;  %v986_v18 = vmul.f32 %v970_v43, %v858_v44 }
 0x2d2   : > { %v1720_v6 = vpop.eup %1719  ;;  %v901_v7 = vmul.f32 %v885_v61, %v2397_v49  ;;  %v931_v52 = vadd.f32 %v915_v0, %v2384_v29  ;;  %v932_v14 = vadd.f32 %v916_v59, %v2376_v22  ;;  %v918_v27 = vmul.f32 %v902_v8, %v2391_v35 }
 0x2d3   : > { %v1722_v19 = vpop.eup %1721  ;;  %v985_v10 = vmul.f32 %v969_v51, %v857_v63  ;;  %v972_v17 = vadd.f32 1.0, %v1720_v6  ;;  %1731 = vtanh.f32 %v945_v1  ;;  %v860_v11 = vmul.f32 0.5, %v2319_v12 }
 0x2d4   : > { %v971_v60 = vadd.f32 1.0, %v1722_v19  ;;  %1733 = vtanh.f32 %v946_v2  ;;  %v947_v3 = vmul.f32 0.7978846, %v931_v52  ;;  %v917_v15 = vmul.f32 %v901_v7, %v2397_v49  ;;  %v1000_v7 = vld [vmem:[#allocation3 + $0x68] sm:$0xff] }
 0x2d5   : > { %1575 = vmatprep.mubr.f32.mxu1 %v985_v10  ;;  %v948_v23 = vmul.f32 0.7978846, %v932_v14  ;;  %v934_v57 = vadd.f32 %v918_v27, %v2391_v35  ;;  %v988_v21 = vmul.f32 %v972_v17, %v860_v11  ;;  %v861_v25 = vmul.f32 0.5, %v2340_v42  ;;  %v999_v52 = vld [vmem:[#allocation3 + $0x28] sm:$0xff]  ;;  %v1002_v10 = vld [vmem:[#allocation3 + $0x40] sm:$0xff] }
 0x2d6   : > { %v1724_v26 = vpop.eup %1723  ;;  %1576 = vmatmul.mubr.f32.gmra.mxu1 %v986_v18  ;;  %v987_v4 = vmul.f32 %v971_v60, %v859_v20  ;;  %1735 = vtanh.f32 %v947_v3  ;;  %v933_v53 = vadd.f32 %v917_v15, %v2397_v49  ;;  %v862_v12 = vmul.f32 0.5, %v2333_v34  ;;  %v1004_v3 = vld [vmem:[#allocation3 + $0x30] sm:$0xff]  ;;  %v1003_v15 = vld [vmem:[#allocation3 + $0x48] sm:$0xff] }
 0x2d7   : > { %v974_v24 = vadd.f32 1.0, %v1724_v26  ;;  %1737 = vtanh.f32 %v948_v23  ;;  %v950_v32 = vmul.f32 0.7978846, %v934_v57  ;;  %v863_v39 = vmul.f32 0.5, %v2354_v62 }
 0x2d8   : > { %v1726_v9 = vpop.eup %1725  ;;  %1578 = vmatprep.mubr.f32.mxu1 %v987_v4  ;;  %v949_v31 = vmul.f32 0.7978846, %v933_v53  ;;  %v864_v42 = vmul.f32 0.5, %v2347_v50  ;;  %v865_v34 = vmul.f32 0.5, %v2368_v13  ;;  %v866_v36 = vmul.f32 0.5, %v2361_v5  ;;  %v1006_v4 = vld [vmem:[#allocation3 + $0x38] sm:$0xff] }
 0x2d9   : > { %v973_v30 = vadd.f32 1.0, %v1726_v9  ;;  %v990_v37 = vmul.f32 %v974_v24, %v862_v12  ;;  %v867_v62 = vmul.f32 0.5, %v2384_v29  ;;  %v868_v63 = vmul.f32 0.5, %v2376_v22  ;;  %v1005_v53 = vld [vmem:[#allocation3 + $0x70] sm:$0xff] }
 0x2da   : > { %v1728_v33 = vpop.eup %1727  ;;  %1579 = vmatmul.mubr.f32.gmra.mxu1 %v988_v21  ;;  %1739 = vtanh.f32 %v949_v31  ;;  %v869_v5 = vmul.f32 0.5, %v2397_v49  ;;  %v870_v1 = vmul.f32 0.5, %v2391_v35  ;;  %v1001_v49 = vld [vmem:[#allocation3 + $0x10] sm:$0xff]  ;;  %v1008_v21 = vld [vmem:[#allocation3 + $0x78] sm:$0xff] }
 0x2db   : > { %v989_v28 = vmul.f32 %v973_v30, %v861_v25  ;;  %v976_v38 = vadd.f32 1.0, %v1728_v33  ;;  %1741 = vtanh.f32 %v950_v32  ;;  %v1007_v30 = vld [vmem:[#allocation3 + $0x20] sm:$0xff]  ;;  %v1010_v33 = vld [vmem:[#allocation3 + $0x58] sm:$0xff] }
 0x2dc   : > { %v1730_v16 = vpop.eup %1729 }
 0x2dd   : > { %1581 = vmatprep.mubr.f32.mxu1 %v989_v28  ;;  %v975_v40 = vadd.f32 1.0, %v1730_v16  ;;  %v992_v46 = vmul.f32 %v976_v38, %v864_v42  ;;  %v1009_v16 = vld [vmem:[#allocation3 + $0x18] sm:$0xff] }
 0x2de   : > { %1582 = vmatmul.mubr.f32.gmra.mxu1 %v990_v37 }
 0x2df   : > { %v991_v41 = vmul.f32 %v975_v40, %v863_v39  ;;  %v1012_v39 = vld [vmem:[#allocation3 + $0x8] sm:$0xff] }
 0x2e0   : > { %v1732_v45 = vpop.eup %1731 }
 0x2e1   : > { %v1734_v47 = vpop.eup %1733  ;;  %1584 = vmatprep.mubr.f32.mxu1 %v991_v41  ;;  %v977_v48 = vadd.f32 1.0, %v1732_v45  ;;  %v1011_v41 = vld [vmem:[#allocation3] sm:$0xff] }
 0x2e2   : > { %1585 = vmatmul.mubr.f32.gmra.mxu1 %v992_v46  ;;  %v978_v54 = vadd.f32 1.0, %v1734_v47  ;;  %v1014_v47 = vld [vmem:[#allocation3 + $0x50] sm:$0xff] }
 0x2e3   : > { %v1736_v43 = vpop.eup %1735  ;;  %v993_v55 = vmul.f32 %v977_v48, %v865_v34 }
 0x2e4   : > { %v994_v56 = vmul.f32 %v978_v54, %v866_v36  ;;  %v979_v58 = vadd.f32 1.0, %v1736_v43  ;;  %v1738_v61 = vpop.eup %1737  ;;  %v1013_v36 = vld [vmem:[#allocation3 + $0x60] sm:$0xff] }
 0x2e5   : > { %1587 = vmatprep.mubr.f32.mxu1 %v993_v55  ;;  %v980_v44 = vadd.f32 1.0, %v1738_v61 }
 0x2e6   : > { %1588 = vmatmul.mubr.f32.gmra.mxu1 %v994_v56  ;;  %v995_v50 = vmul.f32 %v979_v58, %v867_v62 }
 0x2e7   : > { %v1740_v0 = vpop.eup %1739  ;;  %v996_v13 = vmul.f32 %v980_v44, %v868_v63 }
 0x2e8   : > { %1590 = vmatprep.mubr.f32.mxu1 %v995_v50  ;;  %v1742_v8 = vpop.eup %1741  ;;  %v981_v51 = vadd.f32 1.0, %v1740_v0 }
 0x2e9   : > { %v982_v2 = vadd.f32 1.0, %v1742_v8 }
 0x2ea   : > { %1591 = vmatmul.mubr.f32.gmra.mxu1 %v996_v13  ;;  %v997_v29 = vmul.f32 %v981_v51, %v869_v5 }
 0x2eb   : > { %v998_v6 = vmul.f32 %v982_v2, %v870_v1 }
 0x2ec   : > { %1593 = vmatprep.mubr.f32.mxu1 %v997_v29 }
 0x2ee   : > { %1594 = vmatmul.mubr.f32.gmra.mxu1 %v998_v6 }
 0x391   : > { %v1574_v20 = vpop.f32.mrf.mxu1 }
 0x392   : > { %v1177_v22 = vadd.f32 %v1574_v20, %v1000_v7 }
 0x393   : > { %v1097_v59 = vpop.f32.mrf.mxu1 }
 0x394   : > { %1193 = vst [vmem:[#allocation3 + $0x68] sm:$0xff] %v1177_v22  ;;  %v1176_v19 = vadd.f32 %v1097_v59, %v999_v52 }
 0x396   : > { %1192 = vst [vmem:[#allocation3 + $0x28] sm:$0xff] %v1176_v19  ;;  %v1577_v18 = vpop.f32.mrf.mxu1 }
 0x397   : > { %v1179_v17 = vadd.f32 %v1577_v18, %v1002_v10 }
 0x398   : > { %v1107_v60 = vpop.f32.mrf.mxu1 }
 0x399   : > { %1195 = vst [vmem:[#allocation3 + $0x40] sm:$0xff] %v1179_v17  ;;  %v1178_v35 = vadd.f32 %v1107_v60, %v1001_v49 }
 0x39a   : > { %v1580_v14 = vpop.f32.mrf.mxu1 }
 0x39b   : > { %1194 = vst [vmem:[#allocation3 + $0x10] sm:$0xff] %v1178_v35  ;;  %v1181_v27 = vadd.f32 %v1580_v14, %v1004_v3 }
 0x39c   : > { %v1117_v26 = vpop.f32.mrf.mxu1 }
 0x39d   : > { %1197 = vst [vmem:[#allocation3 + $0x30] sm:$0xff] %v1181_v27  ;;  %v1180_v11 = vadd.f32 %v1117_v26, %v1003_v15 }
 0x39e   : > { %v1583_v23 = vpop.f32.mrf.mxu1 }
 0x39f   : > { %1196 = vst [vmem:[#allocation3 + $0x48] sm:$0xff] %v1180_v11  ;;  %v1183_v57 = vadd.f32 %v1583_v23, %v1006_v4 }
 0x3a0   : > { %v1127_v9 = vpop.f32.mrf.mxu1 }
 0x3a1   : > { %1199 = vst [vmem:[#allocation3 + $0x38] sm:$0xff] %v1183_v57  ;;  %v1182_v24 = vadd.f32 %v1127_v9, %v1005_v53 }
 0x3a2   : > { %v1586_v25 = vpop.f32.mrf.mxu1 }
 0x3a3   : > { %1198 = vst [vmem:[#allocation3 + $0x70] sm:$0xff] %v1182_v24  ;;  %v1185_v31 = vadd.f32 %v1586_v25, %v1008_v21 }
 0x3a4   : > { %v1137_v32 = vpop.f32.mrf.mxu1 }
 0x3a5   : > { %1201 = vst [vmem:[#allocation3 + $0x78] sm:$0xff] %v1185_v31  ;;  %v1184_v12 = vadd.f32 %v1137_v32, %v1007_v30 }
 0x3a6   : > { %v1589_v28 = vpop.f32.mrf.mxu1 }
 0x3a7   : > { %1200 = vst [vmem:[#allocation3 + $0x20] sm:$0xff] %v1184_v12  ;;  %v1187_v37 = vadd.f32 %v1589_v28, %v1010_v33 }
 0x3a8   : > { %v1147_v38 = vpop.f32.mrf.mxu1 }
 0x3a9   : > { %1203 = vst [vmem:[#allocation3 + $0x58] sm:$0xff] %v1187_v37  ;;  %v1186_v40 = vadd.f32 %v1147_v38, %v1009_v16 }
 0x3aa   : > { %v1592_v42 = vpop.f32.mrf.mxu1 }
 0x3ab   : > { %1202 = vst [vmem:[#allocation3 + $0x18] sm:$0xff] %v1186_v40  ;;  %v1189_v45 = vadd.f32 %v1592_v42, %v1012_v39 }
 0x3ac   : > { %v1157_v46 = vpop.f32.mrf.mxu1 }
 0x3ad   : > { %1205 = vst [vmem:[#allocation3 + $0x8] sm:$0xff] %v1189_v45  ;;  %v1188_v34 = vadd.f32 %v1157_v46, %v1011_v41 }
 0x3ae   : > { %v1595_v48 = vpop.f32.mrf.mxu1 }
 0x3af   : > { %1204 = vst [vmem:[#allocation3] sm:$0xff] %v1188_v34  ;;  %v1191_v54 = vadd.f32 %v1595_v48, %v1014_v47  ;;  %1211 = sbr.rel (%p1413_p8) target bundleno = 959 (0x3bf), region = 72 }
 0x3b0   : > { %v1167_v43 = vpop.f32.mrf.mxu1 }
 0x3b1   : > { %1207 = vst [vmem:[#allocation3 + $0x50] sm:$0xff] %v1191_v54  ;;  %v1190_v55 = vadd.f32 %v1167_v43, %v1013_v36 }
 0x3b3   : > { %1206 = vst [vmem:[#allocation3 + $0x60] sm:$0xff] %v1190_v55 }
 0x3b4   : > { %v1212_v56 = vld [vmem:[#allocation3 + $0x28] sm:$0xff]  ;;  %v1414_v62 = vld [vmem:[%s2459_s6] ss:$0 sm:$0xff]  ;;  %v1214_v63 = vld [vmem:[#allocation3 + $0x10] sm:$0xff] }
 0x3b5   : > { %v1213_v58 = vld [vmem:[#allocation3 + $0x68] sm:$0xff]  ;;  %v1235_v61 = vadd.f32 %v1414_v62, %v1212_v56  ;;  %v1215_v44 = vld [vmem:[#allocation3 + $0x40] sm:$0xff]  ;;  %v1237_v13 = vadd.f32 %v1414_v62, %v1214_v63  ;;  %v1217_v51 = vld [vmem:[#allocation3 + $0x30] sm:$0xff] }
 0x3b6   : > { %v1236_v50 = vadd.f32 %v1414_v62, %v1213_v58  ;;  %v1216_v0 = vld [vmem:[#allocation3 + $0x48] sm:$0xff]  ;;  %v1238_v8 = vadd.f32 %v1414_v62, %v1215_v44  ;;  %v1218_v1 = vld [vmem:[#allocation3 + $0x70] sm:$0xff]  ;;  %v1219_v2 = vld [vmem:[#allocation3 + $0x38] sm:$0xff]  ;;  %v1240_v29 = vadd.f32 %v1414_v62, %v1217_v51 }
 0x3b7   : > { %v1239_v5 = vadd.f32 %v1414_v62, %v1216_v0  ;;  %1251 = vst [vmem:[#allocation11] sm:$0xff] %v1235_v61  ;;  %v1241_v6 = vadd.f32 %v1414_v62, %v1218_v1  ;;  %v1242_v7 = vadd.f32 %v1414_v62, %v1219_v2  ;;  %v1220_v20 = vld [vmem:[#allocation3 + $0x20] sm:$0xff]  ;;  %v1221_v52 = vld [vmem:[#allocation3 + $0x78] sm:$0xff]  ;;  %1253 = vst [vmem:[#allocation11 + $0x10] sm:$0xff] %v1237_v13 }
 0x3b8   : > { %1252 = vst [vmem:[#allocation11 + $0x8] sm:$0xff] %v1236_v50  ;;  %v1222_v22 = vld [vmem:[#allocation3 + $0x18] sm:$0xff]  ;;  %1254 = vst [vmem:[#allocation11 + $0x18] sm:$0xff] %v1238_v8  ;;  %v1243_v59 = vadd.f32 %v1414_v62, %v1220_v20  ;;  %v1244_v19 = vadd.f32 %v1414_v62, %v1221_v52  ;;  %v1224_v49 = vld [vmem:[#allocation3] sm:$0xff] }
 0x3b9   : > { %1255 = vst [vmem:[#allocation11 + $0x20] sm:$0xff] %v1239_v5  ;;  %v1245_v10 = vadd.f32 %v1414_v62, %v1222_v22  ;;  %v1223_v18 = vld [vmem:[#allocation3 + $0x58] sm:$0xff]  ;;  %v1225_v17 = vld [vmem:[#allocation3 + $0x8] sm:$0xff]  ;;  %1256 = vst [vmem:[#allocation11 + $0x28] sm:$0xff] %v1240_v29  ;;  %v1247_v3 = vadd.f32 %v1414_v62, %v1224_v49 }
 0x3ba   : > { %1257 = vst [vmem:[#allocation11 + $0x30] sm:$0xff] %v1241_v6  ;;  %1258 = vst [vmem:[#allocation11 + $0x38] sm:$0xff] %v1242_v7  ;;  %v1246_v60 = vadd.f32 %v1414_v62, %v1223_v18  ;;  %v1248_v35 = vadd.f32 %v1414_v62, %v1225_v17  ;;  %v1226_v14 = vld [vmem:[#allocation3 + $0x60] sm:$0xff]  ;;  %v1227_v15 = vld [vmem:[#allocation3 + $0x50] sm:$0xff] }
 0x3bb   : > { %1259 = vst [vmem:[#allocation11 + $0x40] sm:$0xff] %v1243_v59  ;;  %1260 = vst [vmem:[#allocation11 + $0x48] sm:$0xff] %v1244_v19  ;;  %v1249_v27 = vadd.f32 %v1414_v62, %v1226_v14  ;;  %v1250_v26 = vadd.f32 %v1414_v62, %v1227_v15 }
 0x3bc   : > { %1261 = vst [vmem:[#allocation11 + $0x50] sm:$0xff] %v1245_v10  ;;  %1262 = vst [vmem:[#allocation11 + $0x58] sm:$0xff] %v1246_v60 }
 0x3bd   : > { %1263 = vst [vmem:[#allocation11 + $0x60] sm:$0xff] %v1247_v3  ;;  %1264 = vst [vmem:[#allocation11 + $0x68] sm:$0xff] %v1248_v35 }
 0x3be   : > { %1265 = vst [vmem:[#allocation11 + $0x70] sm:$0xff] %v1249_v27  ;;  %1266 = vst [vmem:[#allocation11 + $0x78] sm:$0xff] %v1250_v26 }
 0x3bf PF: > { %p1415_p1 = scmp.ne.s32.totalorder %s2009_s30, 1 }
 0x3c1   : > { %1269 = sbr.rel (%p1415_p1) target bundleno = 979 (0x3d3), region = 76 }
 0x3c6   : > { %1275 = vsyncadd [#allocation6], 1792  ;;  %s1937_s27 = smov [#allocation11]  }
 0x3c7   : > { %s1280_s18 = sshll.u32 %s1937_s27, 4  ;;  %s1281_s18 = int_to_ptr.vmem [resolvable:$true] %s1280_s18 }
 0x3c8   : > { %s1843_s20 = scalar_lea.vmem %s1281_s18, 256  ;;  %s1847_s16 = scalar_lea.vmem %s1281_s18, 2048 }
 0x3c9   : > { %p1844_p2 = scmp.ne.s32.totalorder %s1281_s18, %s1843_s20  ;;  %p1848_p11 = scmp.lt.s32.totalorder %s1281_s18, %s1281_s18 }
 0x3ca   : > { %p1849_p12 = scmp.lt.s32.totalorder %s1847_s16, %s1843_s20 }
 0x3cc   : > { %p1850_p13 = por %p1849_p12, %p1848_p11 }
 0x3ce   : > { %p1851_p0 = pnand %p1850_p13, %p1844_p2 }
 0x3d0   : > { %1854 = shalt.err (!%p1851_p0)
}
 0x3d1   : > { %s1938_s10 = smov 128   ;;  %s1939_s0 = smov 8  }
 0x3d2   : > { %1286 = dma.vmem_to_hbm [thread:$0]  %s1281_s18, 256, %s2460_s7, [#allocation6], %s1938_s10, %s1938_s10, %s1939_s0  }
 0x3d3 PF: > { %p1619_p4 = scmp.eq.s32.totalorder %s2009_s30, 1 }
 0x3d5   : > { %1900 = dma.done.wait (%p1619_p4), [#allocation6], 2048  }
 0x3d6   : > { %1902 = vsyncadd (%p1619_p4), [#allocation6], 4294965248 }
 0x3d7 PF: > { %s20_s29 = sadd.s32 1, %s1925_s29   ;;  %s2474_s8 = sld [smem:[#allocation17_spill]] }
 0x3d8   : > { %p17_p6 = scmp.ge.s32.totalorder %s20_s29, 4   ;;  %s2475_s13 = sld [smem:[#allocation16_spill]] }
 0x3d9   : > { %s2476_s24 = smov %s1909_s25  ;;  %s2477_s25 = smov %s1913_s26 }
 0x3da   : > { %s2479_s27 = smov %s1921_s28  ;;  %19 = sbr.rel (!%p17_p6) target bundleno = 9 (0x9), region = 116 }
 0x3dd   : > { %s2478_s26 = smov %s2474_s8 }
 0x3de   : > { %s2480_s28 = smov %s2475_s13 }
 0x3df   :  { %1296 = vsyncpa [#allocation5], 1 }
 0x3e0   :  { %1298 = vsyncpa [#allocation5 + $0x1], 1 }
 0x3e1   :  { %1299 = vsyncpa [#allocation8], 1 }
 0x3e2   :  { %1300 = vsyncpa [#allocation6], 1 }
 0x3e3   :  { %1302 = vsyncpa [#allocation6 + $0x1], 1 }

</bundles_post_ra>
